<compile_context>
chip_gen: v5e
topology: v5e:2x2
jax: 0.10.0
libtpu: 0.0.40
codegen_flags: <defaults>
</compile_context>

<pallas_src>
import jax
import jax.numpy as jnp
from jax import lax
from jax.experimental import pallas as pl
from jax.experimental.pallas import tpu as pltpu

HIDDEN = 32        # hidden_size (small stand-in for 512)
VOCAB = 64         # vocab_size (small stand-in)
V_PAD = 128        # vocab padded to a full lane width
SEQ = 8            # input sequence length
SOS_TOKEN = 1      # vocab['<SOS>']
NEG_INF = -1e30    # finite mask value for padded logits columns


def chatbot_kernel(ids_ref, sos_oh_ref,
                   enc_gi_ref, whh_e_ref, enc_bhhn_ref,
                   wcomb_ref, dec_bhhn_ref,
                   wout_ref, bout_ref,
                   out_ref):
    H = HIDDEN
    L = ids_ref.shape[0]
    T, VP = out_ref.shape

    # ------------------------- encoder -------------------------
    # All input-gate work hoisted out of the recurrence: one broadcasted
    # compare + one batched (L, VP) @ (VP, 3H) matmul (b_ih and b_hh_r/z
    # already folded into the enc_gi table).
    iota_lv = lax.broadcasted_iota(jnp.int32, (L, VP), 1)
    onehot_all = (iota_lv == ids_ref[...]).astype(jnp.float32)        # (L, VP)
    gi_all = jnp.dot(onehot_all, enc_gi_ref[...],
                     preferred_element_type=jnp.float32)              # (L, 3H)

    whh_e = whh_e_ref[...]                                            # (H, 3H)
    bhh_n_e = enc_bhhn_ref[...]                                       # (1, H)
    h = jnp.zeros((1, H), jnp.float32)
    for ei in range(L):                       # static unroll (fixed trip count)
        gi = gi_all[ei:ei + 1, :]
        gh = jnp.dot(h, whh_e, preferred_element_type=jnp.float32)    # (1, 3H)
        sig = jax.nn.sigmoid(gi[:, :2 * H] + gh[:, :2 * H])
        r = sig[:, :H]
        z = sig[:, H:]
        n = jnp.tanh(gi[:, 2 * H:] + r * (gh[:, 2 * H:] + bhh_n_e))
        h = n + z * (h - n)

    # --------------- decoder: greedy autoregressive loop ---------------
    wcomb = wcomb_ref[...]                                            # (VP+H, 4H)
    wout = wout_ref[...]                                              # (H, VP)
    bout = bout_ref[...]                                              # (1, VP), pad cols = -1e30
    bhh_n_d = dec_bhhn_ref[...]                                       # (1, H)

    onehot = sos_oh_ref[...]                                          # (1, VP)
    rows = []
    for di in range(T):                       # static unroll (fixed trip count)
        # single fused MXU push: embedding gather + gi + gh + r/z biases
        xin = jnp.concatenate([onehot, h], axis=1)                    # (1, VP+H)
        comb = jnp.dot(xin, wcomb,
                       preferred_element_type=jnp.float32)            # (1, 4H)
        sig = jax.nn.sigmoid(comb[:, :2 * H])
        r = sig[:, :H]
        z = sig[:, H:]
        n = jnp.tanh(comb[:, 2 * H:3 * H] + r * (comb[:, 3 * H:] + bhh_n_d))
        h = n + z * (h - n)

        # output Linear; log-softmax deferred to the epilogue
        logits = jnp.dot(h, wout, preferred_element_type=jnp.float32) + bout
        rows.append(logits)

        # greedy feedback: one-hot straight from the logits vreg
        m = jnp.max(logits, axis=1, keepdims=True)
        onehot = (logits == m).astype(jnp.float32)

    # epilogue: one full-vreg-density log-softmax pass + one lane-dense store
    logits_all = jnp.concatenate(rows, axis=0)                        # (T, VP)
    m_all = jnp.max(logits_all, axis=1, keepdims=True)
    lse = jnp.log(jnp.sum(jnp.exp(logits_all - m_all),
                          axis=1, keepdims=True)) + m_all
    out_ref[...] = logits_all - lse


def _prep_params(params):
    """Fold embeddings / b_ih / b_hh_{r,z} into fused tables, pad lane dim."""
    (emb_enc, wih_e, whh_e, bih_e, bhh_e,
     emb_dec, wih_d, whh_d, bih_d, bhh_d, wout, bout) = params
    H = HIDDEN
    V = emb_enc.shape[0]
    pad = V_PAD - V
    zH = jnp.zeros((1, H), jnp.float32)

    # encoder fused input-gate table: gi + b_ih + [b_hh_r, b_hh_z, 0]
    bhh_rz_e = jnp.concatenate([bhh_e[:, :2 * H], zH], axis=1)
    enc_gi = emb_enc @ wih_e + bih_e + bhh_rz_e                       # (V, 3H)
    enc_gi = jnp.pad(enc_gi, ((0, pad), (0, 0)))                      # (V_PAD, 3H)
    enc_bhhn = bhh_e[:, 2 * H:]                                       # (1, H)

    # decoder fused input-gate table (same folding)
    bhh_rz_d = jnp.concatenate([bhh_d[:, :2 * H], zH], axis=1)
    dec_gi = emb_dec @ wih_d + bih_d + bhh_rz_d                       # (V, 3H)
    dec_gi = jnp.pad(dec_gi, ((0, pad), (0, 0)))                      # (V_PAD, 3H)
    dec_bhhn = bhh_d[:, 2 * H:]                                       # (1, H)

    # combined decoder table: [onehot ; h] @ W_comb -> (a_r, a_z, gi_n, gh_n)
    top = jnp.concatenate(
        [dec_gi, jnp.zeros((V_PAD, H), jnp.float32)], axis=1)         # (V_PAD, 4H)
    bot = jnp.concatenate(
        [whh_d[:, :2 * H], jnp.zeros((H, H), jnp.float32),
         whh_d[:, 2 * H:]], axis=1)                                   # (H, 4H)
    wcomb = jnp.concatenate([top, bot], axis=0)                       # (V_PAD+H, 4H)

    wout_p = jnp.pad(wout, ((0, 0), (0, pad)))                        # (H, V_PAD)
    bout_p = jnp.concatenate(
        [bout, jnp.full((1, pad), NEG_INF, jnp.float32)], axis=1)     # (1, V_PAD)

    return (enc_gi, whh_e, enc_bhhn, wcomb, dec_bhhn, wout_p, bout_p)


def chatbot_forward(input_ids, sos, params):
    T = input_ids.shape[0]   # target_sequence is None -> target_length = input_length
    kernel_params = _prep_params(params)

    ids2d = input_ids.astype(jnp.int32).reshape(T, 1)                 # (L, 1)
    sos_oh = (jnp.arange(V_PAD, dtype=jnp.int32)[None, :] ==
              sos[0].astype(jnp.int32)).astype(jnp.float32)           # (1, V_PAD)

    vmem = pl.BlockSpec(memory_space=pltpu.MemorySpace.VMEM)

    out_padded = pl.pallas_call(
        chatbot_kernel,
        out_shape=jax.ShapeDtypeStruct((T, V_PAD), jnp.float32),
        in_specs=[vmem] * 9,
        out_specs=vmem,
    )(ids2d, sos_oh, *kernel_params)
    return out_padded[:, :VOCAB]


# ---------------- pure-JAX reference (mirrors PyTorch math) ----------------
def _gru_step(x, h, w_ih_t, w_hh_t, b_ih, b_hh, H):
    gi = x @ w_ih_t + b_ih
    gh = h @ w_hh_t + b_hh
    r = jax.nn.sigmoid(gi[:, :H] + gh[:, :H])
    z = jax.nn.sigmoid(gi[:, H:2 * H] + gh[:, H:2 * H])
    n = jnp.tanh(gi[:, 2 * H:] + r * gh[:, 2 * H:])
    return (1.0 - z) * n + z * h


def chatbot_reference(input_ids, sos, params):
    (emb_enc, wih_e, whh_e, bih_e, bhh_e,
     emb_dec, wih_d, whh_d, bih_d, bhh_d, wout, bout) = params
    H = HIDDEN
    T = input_ids.shape[0]

    h = jnp.zeros((1, H), jnp.float32)
    for ei in range(int(T)):
        x = emb_enc[input_ids[ei]][None, :]
        h = _gru_step(x, h, wih_e, whh_e, bih_e, bhh_e, H)

    tok = jnp.asarray(sos[0], jnp.int32)
    rows = []
    for _ in range(int(T)):
        x = emb_dec[tok][None, :]
        h = _gru_step(x, h, wih_d, whh_d, bih_d, bhh_d, H)
        logits = h @ wout + bout
        logp = logits - jax.scipy.special.logsumexp(logits, axis=1, keepdims=True)
        rows.append(logp[0])
        tok = jnp.argmax(logits, axis=1)[0].astype(jnp.int32)
    return jnp.stack(rows, axis=0)


def init_params(key):
    H, V = HIDDEN, VOCAB
    k = 1.0 / jnp.sqrt(jnp.asarray(H, jnp.float32))
    keys = jax.random.split(key, 12)

    def u(kk, shape):
        return jax.random.uniform(kk, shape, jnp.float32, -k, k)

    emb_enc = jax.random.normal(keys[0], (V, H), jnp.float32)
    wih_e = u(keys[1], (H, 3 * H))     # transposed (PyTorch: (3H, H))
    whh_e = u(keys[2], (H, 3 * H))
    bih_e = u(keys[3], (1, 3 * H))
    bhh_e = u(keys[4], (1, 3 * H))
    emb_dec = jax.random.normal(keys[5], (V, H), jnp.float32)
    wih_d = u(keys[6], (H, 3 * H))
    whh_d = u(keys[7], (H, 3 * H))
    bih_d = u(keys[8], (1, 3 * H))
    bhh_d = u(keys[9], (1, 3 * H))
    wout = u(keys[10], (H, V))         # transposed (PyTorch Linear: (V, H))
    bout = u(keys[11], (1, V))
    return (emb_enc, wih_e, whh_e, bih_e, bhh_e,
            emb_dec, wih_d, whh_d, bih_d, bhh_d, wout, bout)


if __name__ == "__main__":
    key = jax.random.PRNGKey(0)
    pkey, ikey = jax.random.split(key)
    params = init_params(pkey)

    input_ids = jax.random.randint(ikey, (SEQ,), 0, VOCAB, dtype=jnp.int32)
    sos = jnp.array([SOS_TOKEN], dtype=jnp.int32)

    out = chatbot_forward(input_ids, sos, params)
    out = jax.block_until_ready(out)

    ref = chatbot_reference(input_ids, sos, params)
    assert out.shape == (SEQ, VOCAB)
    assert bool(jnp.allclose(out, ref, rtol=1e-3, atol=1e-3))
    print("KERNEL_OK")
</pallas_src>

<mosaic_0001>
module attributes {stable_mosaic.version = 11 : i64} {
  func.func @chatbot_kernel(%arg0: memref<8x1xi32, #tpu.memory_space<vmem>>, %arg1: memref<1x128xf32, #tpu.memory_space<vmem>>, %arg2: memref<128x96xf32, #tpu.memory_space<vmem>>, %arg3: memref<32x96xf32, #tpu.memory_space<vmem>>, %arg4: memref<1x32xf32, #tpu.memory_space<vmem>>, %arg5: memref<160x128xf32, #tpu.memory_space<vmem>>, %arg6: memref<1x32xf32, #tpu.memory_space<vmem>>, %arg7: memref<32x128xf32, #tpu.memory_space<vmem>>, %arg8: memref<1x128xf32, #tpu.memory_space<vmem>>, %arg9: memref<8x128xf32, #tpu.memory_space<vmem>>) attributes {dimension_semantics = [], scalar_prefetch = 0 : i64, scratch_operands = 0 : i64, tpu.core_type = #tpu.core_type<tc>} {
    %0 = tpu.iota {dimensions = array<i32: 1>} : vector<8x128xi32>
    %c0 = arith.constant 0 : index
    %c0_0 = arith.constant 0 : index
    %1 = vector.load %arg0[%c0, %c0_0] : memref<8x1xi32, #tpu.memory_space<vmem>>, vector<8x1xi32>
    %2 = vector.broadcast %1 : vector<8x1xi32> to vector<8x128xi32>
    %3 = arith.cmpi eq, %0, %2 : vector<8x128xi32>
    %4 = arith.extui %3 : vector<8x128xi1> to vector<8x128xi32>
    %5 = arith.sitofp %4 : vector<8x128xi32> to vector<8x128xf32>
    %c0_1 = arith.constant 0 : index
    %c0_2 = arith.constant 0 : index
    %6 = vector.load %arg2[%c0_1, %c0_2] : memref<128x96xf32, #tpu.memory_space<vmem>>, vector<128x96xf32>
    %cst = arith.constant dense<0.000000e+00> : vector<8x96xf32>
    %7 = tpu.matmul %5, %6, %cst {dimension_numbers = #tpu.dot_dimension_numbers<[1], [0], [0], [1], [0, 0, 1, 1], [], []>} : vector<8x128xf32>, vector<128x96xf32>, vector<8x96xf32> -> vector<8x96xf32>
    %c0_3 = arith.constant 0 : index
    %c0_4 = arith.constant 0 : index
    %8 = vector.load %arg3[%c0_3, %c0_4] : memref<32x96xf32, #tpu.memory_space<vmem>>, vector<32x96xf32>
    %c0_5 = arith.constant 0 : index
    %c0_6 = arith.constant 0 : index
    %9 = vector.load %arg4[%c0_5, %c0_6] : memref<1x32xf32, #tpu.memory_space<vmem>>, vector<1x32xf32>
    %cst_7 = arith.constant 0.000000e+00 : f32
    %10 = vector.broadcast %cst_7 : f32 to vector<1x32xf32>
    %11 = vector.extract_strided_slice %7 {offsets = [0, 0], sizes = [1, 96], strides = [1, 1]} : vector<8x96xf32> to vector<1x96xf32>
    %cst_8 = arith.constant dense<0.000000e+00> : vector<1x96xf32>
    %12 = tpu.matmul %10, %8, %cst_8 {dimension_numbers = #tpu.dot_dimension_numbers<[1], [0], [0], [1], [0, 0, 1, 1], [], []>} : vector<1x32xf32>, vector<32x96xf32>, vector<1x96xf32> -> vector<1x96xf32>
    %13 = vector.extract_strided_slice %11 {offsets = [0, 0], sizes = [1, 64], strides = [1, 1]} : vector<1x96xf32> to vector<1x64xf32>
    %14 = vector.extract_strided_slice %12 {offsets = [0, 0], sizes = [1, 64], strides = [1, 1]} : vector<1x96xf32> to vector<1x64xf32>
    %15 = arith.addf %13, %14 : vector<1x64xf32>
    %16 = arith.negf %15 : vector<1x64xf32>
    %17 = math.exp %16 : vector<1x64xf32>
    %cst_9 = arith.constant 1.000000e+00 : f32
    %18 = vector.broadcast %cst_9 : f32 to vector<1x64xf32>
    %19 = arith.addf %18, %17 : vector<1x64xf32>
    %20 = arith.divf %18, %19 : vector<1x64xf32>
    %21 = vector.extract_strided_slice %20 {offsets = [0, 0], sizes = [1, 32], strides = [1, 1]} : vector<1x64xf32> to vector<1x32xf32>
    %22 = vector.extract_strided_slice %20 {offsets = [0, 32], sizes = [1, 32], strides = [1, 1]} : vector<1x64xf32> to vector<1x32xf32>
    %23 = vector.extract_strided_slice %11 {offsets = [0, 64], sizes = [1, 32], strides = [1, 1]} : vector<1x96xf32> to vector<1x32xf32>
    %24 = vector.extract_strided_slice %12 {offsets = [0, 64], sizes = [1, 32], strides = [1, 1]} : vector<1x96xf32> to vector<1x32xf32>
    %25 = arith.addf %24, %9 : vector<1x32xf32>
    %26 = arith.mulf %21, %25 : vector<1x32xf32>
    %27 = arith.addf %23, %26 : vector<1x32xf32>
    %28 = math.tanh %27 : vector<1x32xf32>
    %29 = arith.subf %10, %28 : vector<1x32xf32>
    %30 = arith.mulf %22, %29 : vector<1x32xf32>
    %31 = arith.addf %28, %30 : vector<1x32xf32>
    %32 = vector.extract_strided_slice %7 {offsets = [1, 0], sizes = [1, 96], strides = [1, 1]} : vector<8x96xf32> to vector<1x96xf32>
    %cst_10 = arith.constant dense<0.000000e+00> : vector<1x96xf32>
    %33 = tpu.matmul %31, %8, %cst_10 {dimension_numbers = #tpu.dot_dimension_numbers<[1], [0], [0], [1], [0, 0, 1, 1], [], []>} : vector<1x32xf32>, vector<32x96xf32>, vector<1x96xf32> -> vector<1x96xf32>
    %34 = vector.extract_strided_slice %32 {offsets = [0, 0], sizes = [1, 64], strides = [1, 1]} : vector<1x96xf32> to vector<1x64xf32>
    %35 = vector.extract_strided_slice %33 {offsets = [0, 0], sizes = [1, 64], strides = [1, 1]} : vector<1x96xf32> to vector<1x64xf32>
    %36 = arith.addf %34, %35 : vector<1x64xf32>
    %37 = arith.negf %36 : vector<1x64xf32>
    %38 = math.exp %37 : vector<1x64xf32>
    %cst_11 = arith.constant 1.000000e+00 : f32
    %39 = vector.broadcast %cst_11 : f32 to vector<1x64xf32>
    %40 = arith.addf %39, %38 : vector<1x64xf32>
    %41 = arith.divf %39, %40 : vector<1x64xf32>
    %42 = vector.extract_strided_slice %41 {offsets = [0, 0], sizes = [1, 32], strides = [1, 1]} : vector<1x64xf32> to vector<1x32xf32>
    %43 = vector.extract_strided_slice %41 {offsets = [0, 32], sizes = [1, 32], strides = [1, 1]} : vector<1x64xf32> to vector<1x32xf32>
    %44 = vector.extract_strided_slice %32 {offsets = [0, 64], sizes = [1, 32], strides = [1, 1]} : vector<1x96xf32> to vector<1x32xf32>
    %45 = vector.extract_strided_slice %33 {offsets = [0, 64], sizes = [1, 32], strides = [1, 1]} : vector<1x96xf32> to vector<1x32xf32>
    %46 = arith.addf %45, %9 : vector<1x32xf32>
    %47 = arith.mulf %42, %46 : vector<1x32xf32>
    %48 = arith.addf %44, %47 : vector<1x32xf32>
    %49 = math.tanh %48 : vector<1x32xf32>
    %50 = arith.subf %31, %49 : vector<1x32xf32>
    %51 = arith.mulf %43, %50 : vector<1x32xf32>
    %52 = arith.addf %49, %51 : vector<1x32xf32>
    %53 = vector.extract_strided_slice %7 {offsets = [2, 0], sizes = [1, 96], strides = [1, 1]} : vector<8x96xf32> to vector<1x96xf32>
    %cst_12 = arith.constant dense<0.000000e+00> : vector<1x96xf32>
    %54 = tpu.matmul %52, %8, %cst_12 {dimension_numbers = #tpu.dot_dimension_numbers<[1], [0], [0], [1], [0, 0, 1, 1], [], []>} : vector<1x32xf32>, vector<32x96xf32>, vector<1x96xf32> -> vector<1x96xf32>
    %55 = vector.extract_strided_slice %53 {offsets = [0, 0], sizes = [1, 64], strides = [1, 1]} : vector<1x96xf32> to vector<1x64xf32>
    %56 = vector.extract_strided_slice %54 {offsets = [0, 0], sizes = [1, 64], strides = [1, 1]} : vector<1x96xf32> to vector<1x64xf32>
    %57 = arith.addf %55, %56 : vector<1x64xf32>
    %58 = arith.negf %57 : vector<1x64xf32>
    %59 = math.exp %58 : vector<1x64xf32>
    %cst_13 = arith.constant 1.000000e+00 : f32
    %60 = vector.broadcast %cst_13 : f32 to vector<1x64xf32>
    %61 = arith.addf %60, %59 : vector<1x64xf32>
    %62 = arith.divf %60, %61 : vector<1x64xf32>
    %63 = vector.extract_strided_slice %62 {offsets = [0, 0], sizes = [1, 32], strides = [1, 1]} : vector<1x64xf32> to vector<1x32xf32>
    %64 = vector.extract_strided_slice %62 {offsets = [0, 32], sizes = [1, 32], strides = [1, 1]} : vector<1x64xf32> to vector<1x32xf32>
    %65 = vector.extract_strided_slice %53 {offsets = [0, 64], sizes = [1, 32], strides = [1, 1]} : vector<1x96xf32> to vector<1x32xf32>
    %66 = vector.extract_strided_slice %54 {offsets = [0, 64], sizes = [1, 32], strides = [1, 1]} : vector<1x96xf32> to vector<1x32xf32>
    %67 = arith.addf %66, %9 : vector<1x32xf32>
    %68 = arith.mulf %63, %67 : vector<1x32xf32>
    %69 = arith.addf %65, %68 : vector<1x32xf32>
    %70 = math.tanh %69 : vector<1x32xf32>
    %71 = arith.subf %52, %70 : vector<1x32xf32>
    %72 = arith.mulf %64, %71 : vector<1x32xf32>
    %73 = arith.addf %70, %72 : vector<1x32xf32>
    %74 = vector.extract_strided_slice %7 {offsets = [3, 0], sizes = [1, 96], strides = [1, 1]} : vector<8x96xf32> to vector<1x96xf32>
    %cst_14 = arith.constant dense<0.000000e+00> : vector<1x96xf32>
    %75 = tpu.matmul %73, %8, %cst_14 {dimension_numbers = #tpu.dot_dimension_numbers<[1], [0], [0], [1], [0, 0, 1, 1], [], []>} : vector<1x32xf32>, vector<32x96xf32>, vector<1x96xf32> -> vector<1x96xf32>
    %76 = vector.extract_strided_slice %74 {offsets = [0, 0], sizes = [1, 64], strides = [1, 1]} : vector<1x96xf32> to vector<1x64xf32>
    %77 = vector.extract_strided_slice %75 {offsets = [0, 0], sizes = [1, 64], strides = [1, 1]} : vector<1x96xf32> to vector<1x64xf32>
    %78 = arith.addf %76, %77 : vector<1x64xf32>
    %79 = arith.negf %78 : vector<1x64xf32>
    %80 = math.exp %79 : vector<1x64xf32>
    %cst_15 = arith.constant 1.000000e+00 : f32
    %81 = vector.broadcast %cst_15 : f32 to vector<1x64xf32>
    %82 = arith.addf %81, %80 : vector<1x64xf32>
    %83 = arith.divf %81, %82 : vector<1x64xf32>
    %84 = vector.extract_strided_slice %83 {offsets = [0, 0], sizes = [1, 32], strides = [1, 1]} : vector<1x64xf32> to vector<1x32xf32>
    %85 = vector.extract_strided_slice %83 {offsets = [0, 32], sizes = [1, 32], strides = [1, 1]} : vector<1x64xf32> to vector<1x32xf32>
    %86 = vector.extract_strided_slice %74 {offsets = [0, 64], sizes = [1, 32], strides = [1, 1]} : vector<1x96xf32> to vector<1x32xf32>
    %87 = vector.extract_strided_slice %75 {offsets = [0, 64], sizes = [1, 32], strides = [1, 1]} : vector<1x96xf32> to vector<1x32xf32>
    %88 = arith.addf %87, %9 : vector<1x32xf32>
    %89 = arith.mulf %84, %88 : vector<1x32xf32>
    %90 = arith.addf %86, %89 : vector<1x32xf32>
    %91 = math.tanh %90 : vector<1x32xf32>
    %92 = arith.subf %73, %91 : vector<1x32xf32>
    %93 = arith.mulf %85, %92 : vector<1x32xf32>
    %94 = arith.addf %91, %93 : vector<1x32xf32>
    %95 = vector.extract_strided_slice %7 {offsets = [4, 0], sizes = [1, 96], strides = [1, 1]} : vector<8x96xf32> to vector<1x96xf32>
    %cst_16 = arith.constant dense<0.000000e+00> : vector<1x96xf32>
    %96 = tpu.matmul %94, %8, %cst_16 {dimension_numbers = #tpu.dot_dimension_numbers<[1], [0], [0], [1], [0, 0, 1, 1], [], []>} : vector<1x32xf32>, vector<32x96xf32>, vector<1x96xf32> -> vector<1x96xf32>
    %97 = vector.extract_strided_slice %95 {offsets = [0, 0], sizes = [1, 64], strides = [1, 1]} : vector<1x96xf32> to vector<1x64xf32>
    %98 = vector.extract_strided_slice %96 {offsets = [0, 0], sizes = [1, 64], strides = [1, 1]} : vector<1x96xf32> to vector<1x64xf32>
    %99 = arith.addf %97, %98 : vector<1x64xf32>
    %100 = arith.negf %99 : vector<1x64xf32>
    %101 = math.exp %100 : vector<1x64xf32>
    %cst_17 = arith.constant 1.000000e+00 : f32
    %102 = vector.broadcast %cst_17 : f32 to vector<1x64xf32>
    %103 = arith.addf %102, %101 : vector<1x64xf32>
    %104 = arith.divf %102, %103 : vector<1x64xf32>
    %105 = vector.extract_strided_slice %104 {offsets = [0, 0], sizes = [1, 32], strides = [1, 1]} : vector<1x64xf32> to vector<1x32xf32>
    %106 = vector.extract_strided_slice %104 {offsets = [0, 32], sizes = [1, 32], strides = [1, 1]} : vector<1x64xf32> to vector<1x32xf32>
    %107 = vector.extract_strided_slice %95 {offsets = [0, 64], sizes = [1, 32], strides = [1, 1]} : vector<1x96xf32> to vector<1x32xf32>
    %108 = vector.extract_strided_slice %96 {offsets = [0, 64], sizes = [1, 32], strides = [1, 1]} : vector<1x96xf32> to vector<1x32xf32>
    %109 = arith.addf %108, %9 : vector<1x32xf32>
    %110 = arith.mulf %105, %109 : vector<1x32xf32>
    %111 = arith.addf %107, %110 : vector<1x32xf32>
    %112 = math.tanh %111 : vector<1x32xf32>
    %113 = arith.subf %94, %112 : vector<1x32xf32>
    %114 = arith.mulf %106, %113 : vector<1x32xf32>
    %115 = arith.addf %112, %114 : vector<1x32xf32>
    %116 = vector.extract_strided_slice %7 {offsets = [5, 0], sizes = [1, 96], strides = [1, 1]} : vector<8x96xf32> to vector<1x96xf32>
    %cst_18 = arith.constant dense<0.000000e+00> : vector<1x96xf32>
    %117 = tpu.matmul %115, %8, %cst_18 {dimension_numbers = #tpu.dot_dimension_numbers<[1], [0], [0], [1], [0, 0, 1, 1], [], []>} : vector<1x32xf32>, vector<32x96xf32>, vector<1x96xf32> -> vector<1x96xf32>
    %118 = vector.extract_strided_slice %116 {offsets = [0, 0], sizes = [1, 64], strides = [1, 1]} : vector<1x96xf32> to vector<1x64xf32>
    %119 = vector.extract_strided_slice %117 {offsets = [0, 0], sizes = [1, 64], strides = [1, 1]} : vector<1x96xf32> to vector<1x64xf32>
    %120 = arith.addf %118, %119 : vector<1x64xf32>
    %121 = arith.negf %120 : vector<1x64xf32>
    %122 = math.exp %121 : vector<1x64xf32>
    %cst_19 = arith.constant 1.000000e+00 : f32
    %123 = vector.broadcast %cst_19 : f32 to vector<1x64xf32>
    %124 = arith.addf %123, %122 : vector<1x64xf32>
    %125 = arith.divf %123, %124 : vector<1x64xf32>
    %126 = vector.extract_strided_slice %125 {offsets = [0, 0], sizes = [1, 32], strides = [1, 1]} : vector<1x64xf32> to vector<1x32xf32>
    %127 = vector.extract_strided_slice %125 {offsets = [0, 32], sizes = [1, 32], strides = [1, 1]} : vector<1x64xf32> to vector<1x32xf32>
    %128 = vector.extract_strided_slice %116 {offsets = [0, 64], sizes = [1, 32], strides = [1, 1]} : vector<1x96xf32> to vector<1x32xf32>
    %129 = vector.extract_strided_slice %117 {offsets = [0, 64], sizes = [1, 32], strides = [1, 1]} : vector<1x96xf32> to vector<1x32xf32>
    %130 = arith.addf %129, %9 : vector<1x32xf32>
    %131 = arith.mulf %126, %130 : vector<1x32xf32>
    %132 = arith.addf %128, %131 : vector<1x32xf32>
    %133 = math.tanh %132 : vector<1x32xf32>
    %134 = arith.subf %115, %133 : vector<1x32xf32>
    %135 = arith.mulf %127, %134 : vector<1x32xf32>
    %136 = arith.addf %133, %135 : vector<1x32xf32>
    %137 = vector.extract_strided_slice %7 {offsets = [6, 0], sizes = [1, 96], strides = [1, 1]} : vector<8x96xf32> to vector<1x96xf32>
    %cst_20 = arith.constant dense<0.000000e+00> : vector<1x96xf32>
    %138 = tpu.matmul %136, %8, %cst_20 {dimension_numbers = #tpu.dot_dimension_numbers<[1], [0], [0], [1], [0, 0, 1, 1], [], []>} : vector<1x32xf32>, vector<32x96xf32>, vector<1x96xf32> -> vector<1x96xf32>
    %139 = vector.extract_strided_slice %137 {offsets = [0, 0], sizes = [1, 64], strides = [1, 1]} : vector<1x96xf32> to vector<1x64xf32>
    %140 = vector.extract_strided_slice %138 {offsets = [0, 0], sizes = [1, 64], strides = [1, 1]} : vector<1x96xf32> to vector<1x64xf32>
    %141 = arith.addf %139, %140 : vector<1x64xf32>
    %142 = arith.negf %141 : vector<1x64xf32>
    %143 = math.exp %142 : vector<1x64xf32>
    %cst_21 = arith.constant 1.000000e+00 : f32
    %144 = vector.broadcast %cst_21 : f32 to vector<1x64xf32>
    %145 = arith.addf %144, %143 : vector<1x64xf32>
    %146 = arith.divf %144, %145 : vector<1x64xf32>
    %147 = vector.extract_strided_slice %146 {offsets = [0, 0], sizes = [1, 32], strides = [1, 1]} : vector<1x64xf32> to vector<1x32xf32>
    %148 = vector.extract_strided_slice %146 {offsets = [0, 32], sizes = [1, 32], strides = [1, 1]} : vector<1x64xf32> to vector<1x32xf32>
    %149 = vector.extract_strided_slice %137 {offsets = [0, 64], sizes = [1, 32], strides = [1, 1]} : vector<1x96xf32> to vector<1x32xf32>
    %150 = vector.extract_strided_slice %138 {offsets = [0, 64], sizes = [1, 32], strides = [1, 1]} : vector<1x96xf32> to vector<1x32xf32>
    %151 = arith.addf %150, %9 : vector<1x32xf32>
    %152 = arith.mulf %147, %151 : vector<1x32xf32>
    %153 = arith.addf %149, %152 : vector<1x32xf32>
    %154 = math.tanh %153 : vector<1x32xf32>
    %155 = arith.subf %136, %154 : vector<1x32xf32>
    %156 = arith.mulf %148, %155 : vector<1x32xf32>
    %157 = arith.addf %154, %156 : vector<1x32xf32>
    %158 = vector.extract_strided_slice %7 {offsets = [7, 0], sizes = [1, 96], strides = [1, 1]} : vector<8x96xf32> to vector<1x96xf32>
    %cst_22 = arith.constant dense<0.000000e+00> : vector<1x96xf32>
    %159 = tpu.matmul %157, %8, %cst_22 {dimension_numbers = #tpu.dot_dimension_numbers<[1], [0], [0], [1], [0, 0, 1, 1], [], []>} : vector<1x32xf32>, vector<32x96xf32>, vector<1x96xf32> -> vector<1x96xf32>
    %160 = vector.extract_strided_slice %158 {offsets = [0, 0], sizes = [1, 64], strides = [1, 1]} : vector<1x96xf32> to vector<1x64xf32>
    %161 = vector.extract_strided_slice %159 {offsets = [0, 0], sizes = [1, 64], strides = [1, 1]} : vector<1x96xf32> to vector<1x64xf32>
    %162 = arith.addf %160, %161 : vector<1x64xf32>
    %163 = arith.negf %162 : vector<1x64xf32>
    %164 = math.exp %163 : vector<1x64xf32>
    %cst_23 = arith.constant 1.000000e+00 : f32
    %165 = vector.broadcast %cst_23 : f32 to vector<1x64xf32>
    %166 = arith.addf %165, %164 : vector<1x64xf32>
    %167 = arith.divf %165, %166 : vector<1x64xf32>
    %168 = vector.extract_strided_slice %167 {offsets = [0, 0], sizes = [1, 32], strides = [1, 1]} : vector<1x64xf32> to vector<1x32xf32>
    %169 = vector.extract_strided_slice %167 {offsets = [0, 32], sizes = [1, 32], strides = [1, 1]} : vector<1x64xf32> to vector<1x32xf32>
    %170 = vector.extract_strided_slice %158 {offsets = [0, 64], sizes = [1, 32], strides = [1, 1]} : vector<1x96xf32> to vector<1x32xf32>
    %171 = vector.extract_strided_slice %159 {offsets = [0, 64], sizes = [1, 32], strides = [1, 1]} : vector<1x96xf32> to vector<1x32xf32>
    %172 = arith.addf %171, %9 : vector<1x32xf32>
    %173 = arith.mulf %168, %172 : vector<1x32xf32>
    %174 = arith.addf %170, %173 : vector<1x32xf32>
    %175 = math.tanh %174 : vector<1x32xf32>
    %176 = arith.subf %157, %175 : vector<1x32xf32>
    %177 = arith.mulf %169, %176 : vector<1x32xf32>
    %178 = arith.addf %175, %177 : vector<1x32xf32>
    %c0_24 = arith.constant 0 : index
    %c0_25 = arith.constant 0 : index
    %179 = vector.load %arg5[%c0_24, %c0_25] : memref<160x128xf32, #tpu.memory_space<vmem>>, vector<160x128xf32>
    %c0_26 = arith.constant 0 : index
    %c0_27 = arith.constant 0 : index
    %180 = vector.load %arg7[%c0_26, %c0_27] : memref<32x128xf32, #tpu.memory_space<vmem>>, vector<32x128xf32>
    %c0_28 = arith.constant 0 : index
    %c0_29 = arith.constant 0 : index
    %181 = vector.load %arg8[%c0_28, %c0_29] : memref<1x128xf32, #tpu.memory_space<vmem>>, vector<1x128xf32>
    %c0_30 = arith.constant 0 : index
    %c0_31 = arith.constant 0 : index
    %182 = vector.load %arg6[%c0_30, %c0_31] : memref<1x32xf32, #tpu.memory_space<vmem>>, vector<1x32xf32>
    %c0_32 = arith.constant 0 : index
    %c0_33 = arith.constant 0 : index
    %183 = vector.load %arg1[%c0_32, %c0_33] : memref<1x128xf32, #tpu.memory_space<vmem>>, vector<1x128xf32>
    %184 = tpu.concatenate %183, %178 in 1 : vector<1x128xf32>, vector<1x32xf32> -> vector<1x160xf32>
    %cst_34 = arith.constant dense<0.000000e+00> : vector<1x128xf32>
    %185 = tpu.matmul %184, %179, %cst_34 {dimension_numbers = #tpu.dot_dimension_numbers<[1], [0], [0], [1], [0, 0, 1, 1], [], []>} : vector<1x160xf32>, vector<160x128xf32>, vector<1x128xf32> -> vector<1x128xf32>
    %186 = vector.extract_strided_slice %185 {offsets = [0, 0], sizes = [1, 64], strides = [1, 1]} : vector<1x128xf32> to vector<1x64xf32>
    %187 = arith.negf %186 : vector<1x64xf32>
    %188 = math.exp %187 : vector<1x64xf32>
    %cst_35 = arith.constant 1.000000e+00 : f32
    %189 = vector.broadcast %cst_35 : f32 to vector<1x64xf32>
    %190 = arith.addf %189, %188 : vector<1x64xf32>
    %191 = arith.divf %189, %190 : vector<1x64xf32>
    %192 = vector.extract_strided_slice %191 {offsets = [0, 0], sizes = [1, 32], strides = [1, 1]} : vector<1x64xf32> to vector<1x32xf32>
    %193 = vector.extract_strided_slice %191 {offsets = [0, 32], sizes = [1, 32], strides = [1, 1]} : vector<1x64xf32> to vector<1x32xf32>
    %194 = vector.extract_strided_slice %185 {offsets = [0, 64], sizes = [1, 32], strides = [1, 1]} : vector<1x128xf32> to vector<1x32xf32>
    %195 = vector.extract_strided_slice %185 {offsets = [0, 96], sizes = [1, 32], strides = [1, 1]} : vector<1x128xf32> to vector<1x32xf32>
    %196 = arith.addf %195, %182 : vector<1x32xf32>
    %197 = arith.mulf %192, %196 : vector<1x32xf32>
    %198 = arith.addf %194, %197 : vector<1x32xf32>
    %199 = math.tanh %198 : vector<1x32xf32>
    %200 = arith.subf %178, %199 : vector<1x32xf32>
    %201 = arith.mulf %193, %200 : vector<1x32xf32>
    %202 = arith.addf %199, %201 : vector<1x32xf32>
    %cst_36 = arith.constant dense<0.000000e+00> : vector<1x128xf32>
    %203 = tpu.matmul %202, %180, %cst_36 {dimension_numbers = #tpu.dot_dimension_numbers<[1], [0], [0], [1], [0, 0, 1, 1], [], []>} : vector<1x32xf32>, vector<32x128xf32>, vector<1x128xf32> -> vector<1x128xf32>
    %204 = arith.addf %203, %181 : vector<1x128xf32>
    %cst_37 = arith.constant dense<0xFF800000> : vector<1xf32>
    %205 = vector.multi_reduction <maximumf>, %204, %cst_37 [1] : vector<1x128xf32> to vector<1xf32>
    %206 = vector.shape_cast %205 : vector<1xf32> to vector<1x1xf32>
    %207 = vector.broadcast %206 : vector<1x1xf32> to vector<1x128xf32>
    %208 = arith.cmpf oeq, %204, %207 : vector<1x128xf32>
    %209 = arith.extui %208 : vector<1x128xi1> to vector<1x128xi32>
    %210 = arith.sitofp %209 : vector<1x128xi32> to vector<1x128xf32>
    %211 = tpu.concatenate %210, %202 in 1 : vector<1x128xf32>, vector<1x32xf32> -> vector<1x160xf32>
    %cst_38 = arith.constant dense<0.000000e+00> : vector<1x128xf32>
    %212 = tpu.matmul %211, %179, %cst_38 {dimension_numbers = #tpu.dot_dimension_numbers<[1], [0], [0], [1], [0, 0, 1, 1], [], []>} : vector<1x160xf32>, vector<160x128xf32>, vector<1x128xf32> -> vector<1x128xf32>
    %213 = vector.extract_strided_slice %212 {offsets = [0, 0], sizes = [1, 64], strides = [1, 1]} : vector<1x128xf32> to vector<1x64xf32>
    %214 = arith.negf %213 : vector<1x64xf32>
    %215 = math.exp %214 : vector<1x64xf32>
    %cst_39 = arith.constant 1.000000e+00 : f32
    %216 = vector.broadcast %cst_39 : f32 to vector<1x64xf32>
    %217 = arith.addf %216, %215 : vector<1x64xf32>
    %218 = arith.divf %216, %217 : vector<1x64xf32>
    %219 = vector.extract_strided_slice %218 {offsets = [0, 0], sizes = [1, 32], strides = [1, 1]} : vector<1x64xf32> to vector<1x32xf32>
    %220 = vector.extract_strided_slice %218 {offsets = [0, 32], sizes = [1, 32], strides = [1, 1]} : vector<1x64xf32> to vector<1x32xf32>
    %221 = vector.extract_strided_slice %212 {offsets = [0, 64], sizes = [1, 32], strides = [1, 1]} : vector<1x128xf32> to vector<1x32xf32>
    %222 = vector.extract_strided_slice %212 {offsets = [0, 96], sizes = [1, 32], strides = [1, 1]} : vector<1x128xf32> to vector<1x32xf32>
    %223 = arith.addf %222, %182 : vector<1x32xf32>
    %224 = arith.mulf %219, %223 : vector<1x32xf32>
    %225 = arith.addf %221, %224 : vector<1x32xf32>
    %226 = math.tanh %225 : vector<1x32xf32>
    %227 = arith.subf %202, %226 : vector<1x32xf32>
    %228 = arith.mulf %220, %227 : vector<1x32xf32>
    %229 = arith.addf %226, %228 : vector<1x32xf32>
    %cst_40 = arith.constant dense<0.000000e+00> : vector<1x128xf32>
    %230 = tpu.matmul %229, %180, %cst_40 {dimension_numbers = #tpu.dot_dimension_numbers<[1], [0], [0], [1], [0, 0, 1, 1], [], []>} : vector<1x32xf32>, vector<32x128xf32>, vector<1x128xf32> -> vector<1x128xf32>
    %231 = arith.addf %230, %181 : vector<1x128xf32>
    %cst_41 = arith.constant dense<0xFF800000> : vector<1xf32>
    %232 = vector.multi_reduction <maximumf>, %231, %cst_41 [1] : vector<1x128xf32> to vector<1xf32>
    %233 = vector.shape_cast %232 : vector<1xf32> to vector<1x1xf32>
    %234 = vector.broadcast %233 : vector<1x1xf32> to vector<1x128xf32>
    %235 = arith.cmpf oeq, %231, %234 : vector<1x128xf32>
    %236 = arith.extui %235 : vector<1x128xi1> to vector<1x128xi32>
    %237 = arith.sitofp %236 : vector<1x128xi32> to vector<1x128xf32>
    %238 = tpu.concatenate %237, %229 in 1 : vector<1x128xf32>, vector<1x32xf32> -> vector<1x160xf32>
    %cst_42 = arith.constant dense<0.000000e+00> : vector<1x128xf32>
    %239 = tpu.matmul %238, %179, %cst_42 {dimension_numbers = #tpu.dot_dimension_numbers<[1], [0], [0], [1], [0, 0, 1, 1], [], []>} : vector<1x160xf32>, vector<160x128xf32>, vector<1x128xf32> -> vector<1x128xf32>
    %240 = vector.extract_strided_slice %239 {offsets = [0, 0], sizes = [1, 64], strides = [1, 1]} : vector<1x128xf32> to vector<1x64xf32>
    %241 = arith.negf %240 : vector<1x64xf32>
    %242 = math.exp %241 : vector<1x64xf32>
    %cst_43 = arith.constant 1.000000e+00 : f32
    %243 = vector.broadcast %cst_43 : f32 to vector<1x64xf32>
    %244 = arith.addf %243, %242 : vector<1x64xf32>
    %245 = arith.divf %243, %244 : vector<1x64xf32>
    %246 = vector.extract_strided_slice %245 {offsets = [0, 0], sizes = [1, 32], strides = [1, 1]} : vector<1x64xf32> to vector<1x32xf32>
    %247 = vector.extract_strided_slice %245 {offsets = [0, 32], sizes = [1, 32], strides = [1, 1]} : vector<1x64xf32> to vector<1x32xf32>
    %248 = vector.extract_strided_slice %239 {offsets = [0, 64], sizes = [1, 32], strides = [1, 1]} : vector<1x128xf32> to vector<1x32xf32>
    %249 = vector.extract_strided_slice %239 {offsets = [0, 96], sizes = [1, 32], strides = [1, 1]} : vector<1x128xf32> to vector<1x32xf32>
    %250 = arith.addf %249, %182 : vector<1x32xf32>
    %251 = arith.mulf %246, %250 : vector<1x32xf32>
    %252 = arith.addf %248, %251 : vector<1x32xf32>
    %253 = math.tanh %252 : vector<1x32xf32>
    %254 = arith.subf %229, %253 : vector<1x32xf32>
    %255 = arith.mulf %247, %254 : vector<1x32xf32>
    %256 = arith.addf %253, %255 : vector<1x32xf32>
    %cst_44 = arith.constant dense<0.000000e+00> : vector<1x128xf32>
    %257 = tpu.matmul %256, %180, %cst_44 {dimension_numbers = #tpu.dot_dimension_numbers<[1], [0], [0], [1], [0, 0, 1, 1], [], []>} : vector<1x32xf32>, vector<32x128xf32>, vector<1x128xf32> -> vector<1x128xf32>
    %258 = arith.addf %257, %181 : vector<1x128xf32>
    %cst_45 = arith.constant dense<0xFF800000> : vector<1xf32>
    %259 = vector.multi_reduction <maximumf>, %258, %cst_45 [1] : vector<1x128xf32> to vector<1xf32>
    %260 = vector.shape_cast %259 : vector<1xf32> to vector<1x1xf32>
    %261 = vector.broadcast %260 : vector<1x1xf32> to vector<1x128xf32>
    %262 = arith.cmpf oeq, %258, %261 : vector<1x128xf32>
    %263 = arith.extui %262 : vector<1x128xi1> to vector<1x128xi32>
    %264 = arith.sitofp %263 : vector<1x128xi32> to vector<1x128xf32>
    %265 = tpu.concatenate %264, %256 in 1 : vector<1x128xf32>, vector<1x32xf32> -> vector<1x160xf32>
    %cst_46 = arith.constant dense<0.000000e+00> : vector<1x128xf32>
    %266 = tpu.matmul %265, %179, %cst_46 {dimension_numbers = #tpu.dot_dimension_numbers<[1], [0], [0], [1], [0, 0, 1, 1], [], []>} : vector<1x160xf32>, vector<160x128xf32>, vector<1x128xf32> -> vector<1x128xf32>
    %267 = vector.extract_strided_slice %266 {offsets = [0, 0], sizes = [1, 64], strides = [1, 1]} : vector<1x128xf32> to vector<1x64xf32>
    %268 = arith.negf %267 : vector<1x64xf32>
    %269 = math.exp %268 : vector<1x64xf32>
    %cst_47 = arith.constant 1.000000e+00 : f32
    %270 = vector.broadcast %cst_47 : f32 to vector<1x64xf32>
    %271 = arith.addf %270, %269 : vector<1x64xf32>
    %272 = arith.divf %270, %271 : vector<1x64xf32>
    %273 = vector.extract_strided_slice %272 {offsets = [0, 0], sizes = [1, 32], strides = [1, 1]} : vector<1x64xf32> to vector<1x32xf32>
    %274 = vector.extract_strided_slice %272 {offsets = [0, 32], sizes = [1, 32], strides = [1, 1]} : vector<1x64xf32> to vector<1x32xf32>
    %275 = vector.extract_strided_slice %266 {offsets = [0, 64], sizes = [1, 32], strides = [1, 1]} : vector<1x128xf32> to vector<1x32xf32>
    %276 = vector.extract_strided_slice %266 {offsets = [0, 96], sizes = [1, 32], strides = [1, 1]} : vector<1x128xf32> to vector<1x32xf32>
    %277 = arith.addf %276, %182 : vector<1x32xf32>
    %278 = arith.mulf %273, %277 : vector<1x32xf32>
    %279 = arith.addf %275, %278 : vector<1x32xf32>
    %280 = math.tanh %279 : vector<1x32xf32>
    %281 = arith.subf %256, %280 : vector<1x32xf32>
    %282 = arith.mulf %274, %281 : vector<1x32xf32>
    %283 = arith.addf %280, %282 : vector<1x32xf32>
    %cst_48 = arith.constant dense<0.000000e+00> : vector<1x128xf32>
    %284 = tpu.matmul %283, %180, %cst_48 {dimension_numbers = #tpu.dot_dimension_numbers<[1], [0], [0], [1], [0, 0, 1, 1], [], []>} : vector<1x32xf32>, vector<32x128xf32>, vector<1x128xf32> -> vector<1x128xf32>
    %285 = arith.addf %284, %181 : vector<1x128xf32>
    %cst_49 = arith.constant dense<0xFF800000> : vector<1xf32>
    %286 = vector.multi_reduction <maximumf>, %285, %cst_49 [1] : vector<1x128xf32> to vector<1xf32>
    %287 = vector.shape_cast %286 : vector<1xf32> to vector<1x1xf32>
    %288 = vector.broadcast %287 : vector<1x1xf32> to vector<1x128xf32>
    %289 = arith.cmpf oeq, %285, %288 : vector<1x128xf32>
    %290 = arith.extui %289 : vector<1x128xi1> to vector<1x128xi32>
    %291 = arith.sitofp %290 : vector<1x128xi32> to vector<1x128xf32>
    %292 = tpu.concatenate %291, %283 in 1 : vector<1x128xf32>, vector<1x32xf32> -> vector<1x160xf32>
    %cst_50 = arith.constant dense<0.000000e+00> : vector<1x128xf32>
    %293 = tpu.matmul %292, %179, %cst_50 {dimension_numbers = #tpu.dot_dimension_numbers<[1], [0], [0], [1], [0, 0, 1, 1], [], []>} : vector<1x160xf32>, vector<160x128xf32>, vector<1x128xf32> -> vector<1x128xf32>
    %294 = vector.extract_strided_slice %293 {offsets = [0, 0], sizes = [1, 64], strides = [1, 1]} : vector<1x128xf32> to vector<1x64xf32>
    %295 = arith.negf %294 : vector<1x64xf32>
    %296 = math.exp %295 : vector<1x64xf32>
    %cst_51 = arith.constant 1.000000e+00 : f32
    %297 = vector.broadcast %cst_51 : f32 to vector<1x64xf32>
    %298 = arith.addf %297, %296 : vector<1x64xf32>
    %299 = arith.divf %297, %298 : vector<1x64xf32>
    %300 = vector.extract_strided_slice %299 {offsets = [0, 0], sizes = [1, 32], strides = [1, 1]} : vector<1x64xf32> to vector<1x32xf32>
    %301 = vector.extract_strided_slice %299 {offsets = [0, 32], sizes = [1, 32], strides = [1, 1]} : vector<1x64xf32> to vector<1x32xf32>
    %302 = vector.extract_strided_slice %293 {offsets = [0, 64], sizes = [1, 32], strides = [1, 1]} : vector<1x128xf32> to vector<1x32xf32>
    %303 = vector.extract_strided_slice %293 {offsets = [0, 96], sizes = [1, 32], strides = [1, 1]} : vector<1x128xf32> to vector<1x32xf32>
    %304 = arith.addf %303, %182 : vector<1x32xf32>
    %305 = arith.mulf %300, %304 : vector<1x32xf32>
    %306 = arith.addf %302, %305 : vector<1x32xf32>
    %307 = math.tanh %306 : vector<1x32xf32>
    %308 = arith.subf %283, %307 : vector<1x32xf32>
    %309 = arith.mulf %301, %308 : vector<1x32xf32>
    %310 = arith.addf %307, %309 : vector<1x32xf32>
    %cst_52 = arith.constant dense<0.000000e+00> : vector<1x128xf32>
    %311 = tpu.matmul %310, %180, %cst_52 {dimension_numbers = #tpu.dot_dimension_numbers<[1], [0], [0], [1], [0, 0, 1, 1], [], []>} : vector<1x32xf32>, vector<32x128xf32>, vector<1x128xf32> -> vector<1x128xf32>
    %312 = arith.addf %311, %181 : vector<1x128xf32>
    %cst_53 = arith.constant dense<0xFF800000> : vector<1xf32>
    %313 = vector.multi_reduction <maximumf>, %312, %cst_53 [1] : vector<1x128xf32> to vector<1xf32>
    %314 = vector.shape_cast %313 : vector<1xf32> to vector<1x1xf32>
    %315 = vector.broadcast %314 : vector<1x1xf32> to vector<1x128xf32>
    %316 = arith.cmpf oeq, %312, %315 : vector<1x128xf32>
    %317 = arith.extui %316 : vector<1x128xi1> to vector<1x128xi32>
    %318 = arith.sitofp %317 : vector<1x128xi32> to vector<1x128xf32>
    %319 = tpu.concatenate %318, %310 in 1 : vector<1x128xf32>, vector<1x32xf32> -> vector<1x160xf32>
    %cst_54 = arith.constant dense<0.000000e+00> : vector<1x128xf32>
    %320 = tpu.matmul %319, %179, %cst_54 {dimension_numbers = #tpu.dot_dimension_numbers<[1], [0], [0], [1], [0, 0, 1, 1], [], []>} : vector<1x160xf32>, vector<160x128xf32>, vector<1x128xf32> -> vector<1x128xf32>
    %321 = vector.extract_strided_slice %320 {offsets = [0, 0], sizes = [1, 64], strides = [1, 1]} : vector<1x128xf32> to vector<1x64xf32>
    %322 = arith.negf %321 : vector<1x64xf32>
    %323 = math.exp %322 : vector<1x64xf32>
    %cst_55 = arith.constant 1.000000e+00 : f32
    %324 = vector.broadcast %cst_55 : f32 to vector<1x64xf32>
    %325 = arith.addf %324, %323 : vector<1x64xf32>
    %326 = arith.divf %324, %325 : vector<1x64xf32>
    %327 = vector.extract_strided_slice %326 {offsets = [0, 0], sizes = [1, 32], strides = [1, 1]} : vector<1x64xf32> to vector<1x32xf32>
    %328 = vector.extract_strided_slice %326 {offsets = [0, 32], sizes = [1, 32], strides = [1, 1]} : vector<1x64xf32> to vector<1x32xf32>
    %329 = vector.extract_strided_slice %320 {offsets = [0, 64], sizes = [1, 32], strides = [1, 1]} : vector<1x128xf32> to vector<1x32xf32>
    %330 = vector.extract_strided_slice %320 {offsets = [0, 96], sizes = [1, 32], strides = [1, 1]} : vector<1x128xf32> to vector<1x32xf32>
    %331 = arith.addf %330, %182 : vector<1x32xf32>
    %332 = arith.mulf %327, %331 : vector<1x32xf32>
    %333 = arith.addf %329, %332 : vector<1x32xf32>
    %334 = math.tanh %333 : vector<1x32xf32>
    %335 = arith.subf %310, %334 : vector<1x32xf32>
    %336 = arith.mulf %328, %335 : vector<1x32xf32>
    %337 = arith.addf %334, %336 : vector<1x32xf32>
    %cst_56 = arith.constant dense<0.000000e+00> : vector<1x128xf32>
    %338 = tpu.matmul %337, %180, %cst_56 {dimension_numbers = #tpu.dot_dimension_numbers<[1], [0], [0], [1], [0, 0, 1, 1], [], []>} : vector<1x32xf32>, vector<32x128xf32>, vector<1x128xf32> -> vector<1x128xf32>
    %339 = arith.addf %338, %181 : vector<1x128xf32>
    %cst_57 = arith.constant dense<0xFF800000> : vector<1xf32>
    %340 = vector.multi_reduction <maximumf>, %339, %cst_57 [1] : vector<1x128xf32> to vector<1xf32>
    %341 = vector.shape_cast %340 : vector<1xf32> to vector<1x1xf32>
    %342 = vector.broadcast %341 : vector<1x1xf32> to vector<1x128xf32>
    %343 = arith.cmpf oeq, %339, %342 : vector<1x128xf32>
    %344 = arith.extui %343 : vector<1x128xi1> to vector<1x128xi32>
    %345 = arith.sitofp %344 : vector<1x128xi32> to vector<1x128xf32>
    %346 = tpu.concatenate %345, %337 in 1 : vector<1x128xf32>, vector<1x32xf32> -> vector<1x160xf32>
    %cst_58 = arith.constant dense<0.000000e+00> : vector<1x128xf32>
    %347 = tpu.matmul %346, %179, %cst_58 {dimension_numbers = #tpu.dot_dimension_numbers<[1], [0], [0], [1], [0, 0, 1, 1], [], []>} : vector<1x160xf32>, vector<160x128xf32>, vector<1x128xf32> -> vector<1x128xf32>
    %348 = vector.extract_strided_slice %347 {offsets = [0, 0], sizes = [1, 64], strides = [1, 1]} : vector<1x128xf32> to vector<1x64xf32>
    %349 = arith.negf %348 : vector<1x64xf32>
    %350 = math.exp %349 : vector<1x64xf32>
    %cst_59 = arith.constant 1.000000e+00 : f32
    %351 = vector.broadcast %cst_59 : f32 to vector<1x64xf32>
    %352 = arith.addf %351, %350 : vector<1x64xf32>
    %353 = arith.divf %351, %352 : vector<1x64xf32>
    %354 = vector.extract_strided_slice %353 {offsets = [0, 0], sizes = [1, 32], strides = [1, 1]} : vector<1x64xf32> to vector<1x32xf32>
    %355 = vector.extract_strided_slice %353 {offsets = [0, 32], sizes = [1, 32], strides = [1, 1]} : vector<1x64xf32> to vector<1x32xf32>
    %356 = vector.extract_strided_slice %347 {offsets = [0, 64], sizes = [1, 32], strides = [1, 1]} : vector<1x128xf32> to vector<1x32xf32>
    %357 = vector.extract_strided_slice %347 {offsets = [0, 96], sizes = [1, 32], strides = [1, 1]} : vector<1x128xf32> to vector<1x32xf32>
    %358 = arith.addf %357, %182 : vector<1x32xf32>
    %359 = arith.mulf %354, %358 : vector<1x32xf32>
    %360 = arith.addf %356, %359 : vector<1x32xf32>
    %361 = math.tanh %360 : vector<1x32xf32>
    %362 = arith.subf %337, %361 : vector<1x32xf32>
    %363 = arith.mulf %355, %362 : vector<1x32xf32>
    %364 = arith.addf %361, %363 : vector<1x32xf32>
    %cst_60 = arith.constant dense<0.000000e+00> : vector<1x128xf32>
    %365 = tpu.matmul %364, %180, %cst_60 {dimension_numbers = #tpu.dot_dimension_numbers<[1], [0], [0], [1], [0, 0, 1, 1], [], []>} : vector<1x32xf32>, vector<32x128xf32>, vector<1x128xf32> -> vector<1x128xf32>
    %366 = arith.addf %365, %181 : vector<1x128xf32>
    %cst_61 = arith.constant dense<0xFF800000> : vector<1xf32>
    %367 = vector.multi_reduction <maximumf>, %366, %cst_61 [1] : vector<1x128xf32> to vector<1xf32>
    %368 = vector.shape_cast %367 : vector<1xf32> to vector<1x1xf32>
    %369 = vector.broadcast %368 : vector<1x1xf32> to vector<1x128xf32>
    %370 = arith.cmpf oeq, %366, %369 : vector<1x128xf32>
    %371 = arith.extui %370 : vector<1x128xi1> to vector<1x128xi32>
    %372 = arith.sitofp %371 : vector<1x128xi32> to vector<1x128xf32>
    %373 = tpu.concatenate %372, %364 in 1 : vector<1x128xf32>, vector<1x32xf32> -> vector<1x160xf32>
    %cst_62 = arith.constant dense<0.000000e+00> : vector<1x128xf32>
    %374 = tpu.matmul %373, %179, %cst_62 {dimension_numbers = #tpu.dot_dimension_numbers<[1], [0], [0], [1], [0, 0, 1, 1], [], []>} : vector<1x160xf32>, vector<160x128xf32>, vector<1x128xf32> -> vector<1x128xf32>
    %375 = vector.extract_strided_slice %374 {offsets = [0, 0], sizes = [1, 64], strides = [1, 1]} : vector<1x128xf32> to vector<1x64xf32>
    %376 = arith.negf %375 : vector<1x64xf32>
    %377 = math.exp %376 : vector<1x64xf32>
    %cst_63 = arith.constant 1.000000e+00 : f32
    %378 = vector.broadcast %cst_63 : f32 to vector<1x64xf32>
    %379 = arith.addf %378, %377 : vector<1x64xf32>
    %380 = arith.divf %378, %379 : vector<1x64xf32>
    %381 = vector.extract_strided_slice %380 {offsets = [0, 0], sizes = [1, 32], strides = [1, 1]} : vector<1x64xf32> to vector<1x32xf32>
    %382 = vector.extract_strided_slice %380 {offsets = [0, 32], sizes = [1, 32], strides = [1, 1]} : vector<1x64xf32> to vector<1x32xf32>
    %383 = vector.extract_strided_slice %374 {offsets = [0, 64], sizes = [1, 32], strides = [1, 1]} : vector<1x128xf32> to vector<1x32xf32>
    %384 = vector.extract_strided_slice %374 {offsets = [0, 96], sizes = [1, 32], strides = [1, 1]} : vector<1x128xf32> to vector<1x32xf32>
    %385 = arith.addf %384, %182 : vector<1x32xf32>
    %386 = arith.mulf %381, %385 : vector<1x32xf32>
    %387 = arith.addf %383, %386 : vector<1x32xf32>
    %388 = math.tanh %387 : vector<1x32xf32>
    %389 = arith.subf %364, %388 : vector<1x32xf32>
    %390 = arith.mulf %382, %389 : vector<1x32xf32>
    %391 = arith.addf %388, %390 : vector<1x32xf32>
    %cst_64 = arith.constant dense<0.000000e+00> : vector<1x128xf32>
    %392 = tpu.matmul %391, %180, %cst_64 {dimension_numbers = #tpu.dot_dimension_numbers<[1], [0], [0], [1], [0, 0, 1, 1], [], []>} : vector<1x32xf32>, vector<32x128xf32>, vector<1x128xf32> -> vector<1x128xf32>
    %393 = arith.addf %392, %181 : vector<1x128xf32>
    %394 = tpu.concatenate %204, %231, %258, %285, %312, %339, %366, %393 in 0 : vector<1x128xf32>, vector<1x128xf32>, vector<1x128xf32>, vector<1x128xf32>, vector<1x128xf32>, vector<1x128xf32>, vector<1x128xf32>, vector<1x128xf32> -> vector<8x128xf32>
    %cst_65 = arith.constant dense<0xFF800000> : vector<8xf32>
    %395 = vector.multi_reduction <maximumf>, %394, %cst_65 [1] : vector<8x128xf32> to vector<8xf32>
    %396 = vector.shape_cast %395 : vector<8xf32> to vector<8x1xf32>
    %397 = vector.broadcast %396 : vector<8x1xf32> to vector<8x128xf32>
    %398 = arith.subf %394, %397 : vector<8x128xf32>
    %399 = math.exp %398 : vector<8x128xf32>
    %cst_66 = arith.constant dense<0.000000e+00> : vector<8xf32>
    %400 = vector.multi_reduction <add>, %399, %cst_66 [1] : vector<8x128xf32> to vector<8xf32>
    %401 = vector.shape_cast %400 : vector<8xf32> to vector<8x1xf32>
    %402 = math.log %401 : vector<8x1xf32>
    %403 = arith.addf %402, %396 : vector<8x1xf32>
    %404 = vector.broadcast %403 : vector<8x1xf32> to vector<8x128xf32>
    %405 = arith.subf %394, %404 : vector<8x128xf32>
    %c0_67 = arith.constant 0 : index
    %c0_68 = arith.constant 0 : index
    %406 = vector.load %arg9[%c0_67, %c0_68] : memref<8x128xf32, #tpu.memory_space<vmem>>, vector<8x128xf32>
    tpu.vector_store %arg9[%c0_67, %c0_68], %405 {strides = array<i32>} : memref<8x128xf32, #tpu.memory_space<vmem>>, vector<8x128xf32>,
    return
  }
}

</mosaic_0001>

<bundles_post_ra>
// kernel: tpu_custom_call.1
= control target key start
LH: loop header
LB: loop body
LE: loop exit
PB: predicated region body
PF: predicated region fallthrough
CT: control target
= control target key end

     0   :  { %v1887_v3 = vmov 0   ;;  %s2594_s0 = inlined_call_operand.vmem [shape: s32[8,1], index: 0, kind: input, shape index: {}]   ;;  %s2595_s1 = inlined_call_operand.vmem [shape: f32[1,128], index: 1, kind: input, shape index: {}]   ;;  %s2596_s2 = inlined_call_operand.vmem [shape: f32[128,96], index: 2, kind: input, shape index: {}]   ;;  %s2597_s3 = inlined_call_operand.vmem [shape: f32[32,96], index: 3, kind: input, shape index: {}]   ;;  %s2598_s4 = inlined_call_operand.vmem [shape: f32[1,32], index: 4, kind: input, shape index: {}]   ;;  %s2599_s5 = inlined_call_operand.vmem [shape: f32[160,128], index: 5, kind: input, shape index: {}]   ;;  %s2600_s6 = inlined_call_operand.vmem [shape: f32[1,32], index: 6, kind: input, shape index: {}]   ;;  %s2601_s7 = inlined_call_operand.vmem [shape: f32[32,128], index: 7, kind: input, shape index: {}]   ;;  %s2602_s8 = inlined_call_operand.vmem [shape: f32[1,128], index: 8, kind: input, shape index: {}]   ;;  %s2603_s9 = inlined_call_operand.hbm [shape: f32[8,128], index: 9, kind: output, shape index: {}]  }
   0x1   :  { %v35_v0 = vld [vmem:[%s2594_s0] sm:$0xff]  ;;  %v1950_v1 = vld [vmem:[%s2597_s3 + $0x18] sm:$0xff]  ;;  %v1955_v2 = vld [vmem:[%s2597_s3 + $0x10] sm:$0xff]  ;;  %1758 = vset.pattern.permute.xlu0 %v1887_v3 }
   0x2   :  { %99 = vmatpush.msra.mxu1 %v1950_v1  ;;  %37 = vperm.xlu0 %1758, %v35_v0   ;;  %v1961_v4 = vld [vmem:[%s2597_s3 + $0x8] sm:$0xff]  ;;  %v57_v5 = vld [vmem:[%s2596_s2 + $0x78] sm:$0xff]  ;;  %v56_v6 = vld [vmem:[%s2596_s2 + $0x70] sm:$0xff] }
   0x3   :  { %172 = vmatpush.msra.mxu2 %v1950_v1  ;;  %58 = vmatpush.msra.mxu0 %v57_v5  ;;  %v1974_v7 = vld [vmem:[%s2597_s3] sm:$0xff]  ;;  %v55_v8 = vld [vmem:[%s2596_s2 + $0x68] sm:$0xff] }
   0x4   :  { %100 = vmatpush.msra.mxu1 %v1955_v2  ;;  %480 = vmatpush.msra.mxu3 %v1950_v1  ;;  %v1759_v9 = vld [vmem:[%s2598_s4] ss:$0 sm:$0xff] }
   0x5   :  { %173 = vmatpush.msra.mxu2 %v1955_v2  ;;  %59 = vmatpush.msra.mxu0 %v56_v6  ;;  %v54_v10 = vld [vmem:[%s2596_s2 + $0x60] sm:$0xff] }
   0x6   :  { %101 = vmatpush.msra.mxu1 %v1961_v4  ;;  %481 = vmatpush.msra.mxu3 %v1955_v2 }
   0x7   :  { %174 = vmatpush.msra.mxu2 %v1961_v4  ;;  %60 = vmatpush.msra.mxu0 %v55_v8 }
   0x8   :  { %102 = vmatpush.msra.mxu1 %v1974_v7 }
   0x9   :  { %14 = vsyncpa [#allocation3], 0  ;;  %v1888_v11 = vmov 0.0   ;;  %v53_v12 = vld [vmem:[%s2596_s2 + $0x58] sm:$0xff]  ;;  %175 = vmatpush.msra.mxu2 %v1974_v7  ;;  %61 = vmatpush.msra.mxu0 %v54_v10  ;;  %s1889_s4 = smov 64   ;;  %v52_v13 = vld [vmem:[%s2596_s2 + $0x50] sm:$0xff]  ;;  %v33_v24 = vlaneseq }
   0xa   :  { %103 = vmatmul.f32.vlgmr.msra.gmra.mxu1 %v1888_v11  ;;  %129 = vrot.lane.b32.xlu0 %v1759_v9, %s1889_s4  ;;  %v51_v14 = vld [vmem:[%s2596_s2 + $0x48] sm:$0xff]  ;;  %v50_v15 = vld [vmem:[%s2596_s2 + $0x40] sm:$0xff]  ;;  %v49_v16 = vld [vmem:[%s2596_s2 + $0x38] sm:$0xff]  ;;  %v1890_v27 = vmov 1.0   ;;  %s1892_s28 = smov 32   ;;  %vm83_vm5 = vcmask 261120  }
   0xb   :  { %249 = vmatpush.msrb.mxu2 %v1950_v1  ;;  %326 = vmatpush.msrb.mxu1 %v1950_v1  ;;  %v48_v17 = vld [vmem:[%s2596_s2 + $0x30] sm:$0xff]  ;;  %v47_v18 = vld [vmem:[%s2596_s2 + $0x28] sm:$0xff]  ;;  %v46_v19 = vld [vmem:[%s2596_s2 + $0x20] sm:$0xff]  ;;  %v34_v25 = vand.u32 127, %v33_v24  ;;  %s1687_s14 = sshll.u32 %s2603_s9, 4  ;;  %s1688_s14 = int_to_ptr.hbm [resolvable:$true] %s1687_s14 }
   0xc   :  { %62 = vmatpush.msra.mxu0 %v53_v12  ;;  %482 = vmatpush.msra.mxu3 %v1961_v4  ;;  %v45_v20 = vld [vmem:[%s2596_s2 + $0x18] sm:$0xff]  ;;  %v44_v21 = vld [vmem:[%s2596_s2 + $0x10] sm:$0xff]  ;;  %v43_v22 = vld [vmem:[%s2596_s2 + $0x8] sm:$0xff] }
   0xd   :  { %250 = vmatpush.msrb.mxu2 %v1955_v2  ;;  %327 = vmatpush.msrb.mxu1 %v1955_v2  ;;  %v42_v23 = vld [vmem:[%s2596_s2] sm:$0xff]  ;;  %s1891_s2 = smov 96  }
   0xe   :  { %63 = vmatpush.msra.mxu0 %v52_v13  ;;  %483 = vmatpush.msra.mxu3 %v1974_v7 }
   0xf   :  { %251 = vmatpush.msrb.mxu2 %v1961_v4  ;;  %328 = vmatpush.msrb.mxu1 %v1961_v4 }
  0x10   :  { %64 = vmatpush.msra.mxu0 %v51_v14 }
  0x11   :  { %252 = vmatpush.msrb.mxu2 %v1974_v7  ;;  %329 = vmatpush.msrb.mxu1 %v1974_v7 }
  0x12   :  { %65 = vmatpush.msra.mxu0 %v50_v15 }
  0x13   :  { %557 = vmatpush.msra.mxu1 %v1950_v1 }
  0x14   :  { %66 = vmatpush.msra.mxu0 %v49_v16 }
  0x15   :  { %558 = vmatpush.msra.mxu1 %v1955_v2 }
  0x16   :  { %67 = vmatpush.msra.mxu0 %v48_v17 }
  0x17   :  { %559 = vmatpush.msra.mxu1 %v1961_v4 }
  0x18   :  { %68 = vmatpush.msra.mxu0 %v47_v18 }
  0x19   :  { %560 = vmatpush.msra.mxu1 %v1974_v7 }
  0x1a   :  { %69 = vmatpush.msra.mxu0 %v46_v19 }
  0x1c   :  { %70 = vmatpush.msra.mxu0 %v45_v20 }
  0x1e   :  { %71 = vmatpush.msra.mxu0 %v44_v21 }
  0x20   :  { %72 = vmatpush.msra.mxu0 %v43_v22 }
  0x22   :  { %73 = vmatpush.msra.mxu0 %v42_v23 }
  0x74   :  { %v38_v26 = vpop.permute.xlu0 %37 }
  0x75   :  { %vm39_vm0 = vcmp.eq.s32.totalorder %v34_v25, %v38_v26 }
  0x76   :  { %1697 = vmatmul.msk.f32.vlgmr.msra.gmra.mxu0 %vm39_vm0, %v1890_v27 }
  0x7c   :  { %v2044_v28 = vpop.permute.xlu0 %129 }
  0x87   :  { %v104_v29 = vpop.f32.mrf.mxu1 }
  0x88   :  { %v132_v30 = vadd.f32 %v2044_v28, %v104_v29 }
  0x8a   :  { %134 = vrot.lane.b32.xlu1 %v132_v30, %s1889_s4 }
  0xf3   :  { %v2048_v31 = vpop.f32.mrf.mxu0 }
  0xf4   :  { %v107_v32 = vadd.f32 %v104_v29, %v2048_v31 }
  0xf6   :  { %v1698_v33 = vmul.f32 -1.442695, %v107_v32 }
  0xf8   :  { %1761 = vpow2.f32 %v1698_v33 }
  0xfc   :  { %v135_v43 = vpop.permute.xlu1 %134 }
  0xfe   :  { %v1762_v34 = vpop.eup %1761 }
  0xff   :  { %v111_v35 = vadd.f32 1.0, %v1762_v34 }
 0x101   :  { %1763 = vrcp.f32 %v111_v35  ;;  %v123_v39 = vand.u32 2147483648, %v111_v35  ;;  %v121_v41 = vand.u32 2147483647, %v111_v35  ;;  %vm117_vm2 = vweird.f32 %v111_v35 }
 0x103   :  { %v124_v44 = vor.u32 1.1754944e-38, %v123_v39  ;;  %vm122_vm4 = vcmp.eq.f32.partialorder %v121_v41, 8.507059e+37 }
 0x107   :  { %v1764_v36 = vpop.eup %1763 }
 0x108   :  { %v113_v37 = vmul.f32 %v1764_v36, %v111_v35  ;;  %vm118_vm1 = vweird.f32 %v1764_v36 }
 0x109   :  { %vm119_vm3 = vmor %vm117_vm2, %vm118_vm1 }
 0x10a   :  { %v114_v38 = vsub.f32 1.0, %v113_v37 }
 0x10c   :  { %v115_v40 = vmul.f32 %v1764_v36, %v114_v38 }
 0x10e   :  { %v116_v42 = vadd.f32 %v1764_v36, %v115_v40 }
 0x110   :  { %v120_v45 = vsel %vm119_vm3, %v1764_v36, %v116_v42 }
 0x111   :  { %v125_v46 = vsel %vm122_vm4, %v124_v44, %v120_v45 }
 0x112   :  { %v137_v47 = vmul.f32 %v135_v43, %v125_v46 }
 0x114   :  { %139 = vrot.lane.b32.xlu1 %v137_v47, %s1889_s4 }
 0x186   :  { %v140_v48 = vpop.permute.xlu1 %139 }
 0x187   :  { %v142_v49 = vadd.f32 %v140_v48, %v2048_v31 }
 0x189   :  { %1765 = vtanh.f32 %v142_v49 }
 0x18f   :  { %v1766_v50 = vpop.eup %1765 }
 0x190   :  { %v144_v51 = vsub.f32 0.0, %v1766_v50 }
 0x192   :  { %146 = vrot.lane.b32.xlu2 %v144_v51, %s1891_s2 }
 0x1ec   :  { %v147_v52 = vpop.permute.xlu2 %146 }
 0x1ed   :  { %v149_v53 = vmul.f32 %v147_v52, %v125_v46 }
 0x1ef   :  { %151 = vrot.lane.b32.xlu2 %v149_v53, %s1892_s28 }
 0x249   :  { %v152_v54 = vpop.permute.xlu2 %151 }
 0x24a   :  { %v154_v55 = vadd.f32 %v1766_v50, %v152_v54 }
 0x24c   :  { %156 = vrot.lane.b32.xlu0 %v154_v55, %s1889_s4 }
 0x2be   :  { %v157_v56 = vpop.permute.xlu0 %156 }
 0x2bf   :  { %1699 = vmatmul.msk.f32.vlgmr.msra.gmra.mxu2 %vm83_vm5, %v157_v56 }
 0x2c0   :  { %403 = vmatpush.msra.mxu2 %v1950_v1 }
 0x2c2   :  { %404 = vmatpush.msra.mxu2 %v1955_v2 }
 0x2c4   :  { %405 = vmatpush.msra.mxu2 %v1961_v4 }
 0x2c6   :  { %406 = vmatpush.msra.mxu2 %v1974_v7 }
 0x342   :  { %v177_v57 = vpop.f32.mrf.mxu2 }
 0x343   :  { %v203_v58 = vadd.f32 %v177_v57, %v2044_v28  ;;  %v181_v60 = vrot.slane %v177_v57, 7 }
 0x345   :  { %v205_v59 = vrot.slane %v203_v58, 7  ;;  %v183_v61 = vadd.f32 %v181_v60, %v2048_v31 }
 0x347   :  { %206 = vrot.lane.b32.xlu1 %v205_v59, %s1889_s4  ;;  %v1700_v62 = vmul.f32 -1.442695, %v183_v61 }
 0x349   :  { %1767 = vpow2.f32 %v1700_v62 }
 0x34f   :  { %v1768_v63 = vpop.eup %1767 }
 0x350   :  { %v187_v0 = vadd.f32 1.0, %v1768_v63 }
 0x352   :  { %1769 = vrcp.f32 %v187_v0  ;;  %v199_v10 = vand.u32 2147483648, %v187_v0  ;;  %vm193_vm7 = vweird.f32 %v187_v0  ;;  %v197_v11 = vand.u32 2147483647, %v187_v0 }
 0x354   :  { %v200_v13 = vor.u32 1.1754944e-38, %v199_v10  ;;  %vm198_vm9 = vcmp.eq.f32.partialorder %v197_v11, 8.507059e+37 }
 0x358   :  { %v1770_v3 = vpop.eup %1769 }
 0x359   :  { %v189_v5 = vmul.f32 %v1770_v3, %v187_v0  ;;  %vm194_vm6 = vweird.f32 %v1770_v3 }
 0x35a   :  { %vm195_vm8 = vmor %vm193_vm7, %vm194_vm6 }
 0x35b   :  { %v190_v6 = vsub.f32 1.0, %v189_v5 }
 0x35d   :  { %v191_v8 = vmul.f32 %v1770_v3, %v190_v6 }
 0x35f   :  { %v192_v9 = vadd.f32 %v1770_v3, %v191_v8 }
 0x361   :  { %v196_v12 = vsel %vm195_vm8, %v1770_v3, %v192_v9 }
 0x362   :  { %v201_v15 = vsel %vm198_vm9, %v200_v13, %v196_v12 }
 0x3b9   :  { %v207_v14 = vpop.permute.xlu1 %206 }
 0x3ba   :  { %v209_v16 = vmul.f32 %v207_v14, %v201_v15 }
 0x3bc   :  { %211 = vrot.lane.b32.xlu2 %v209_v16, %s1889_s4 }
 0x416   :  { %v212_v17 = vpop.permute.xlu2 %211 }
 0x417   :  { %v214_v18 = vadd.f32 %v212_v17, %v2048_v31 }
 0x419   :  { %1771 = vtanh.f32 %v214_v18 }
 0x41f   :  { %v1772_v19 = vpop.eup %1771 }
 0x420   :  { %v217_v20 = vrot.slane %v1772_v19, 1 }
 0x422   :  { %v219_v21 = vsub.f32 %v154_v55, %v217_v20 }
 0x424   :  { %v221_v22 = vrot.slane %v219_v21, 7 }
 0x426   :  { %222 = vrot.lane.b32.xlu0 %v221_v22, %s1891_s2 }
 0x498   :  { %v223_v23 = vpop.permute.xlu0 %222 }
 0x499   :  { %v225_v24 = vmul.f32 %v223_v23, %v201_v15 }
 0x49b   :  { %227 = vrot.lane.b32.xlu1 %v225_v24, %s1892_s28 }
 0x50d   :  { %v228_v25 = vpop.permute.xlu1 %227 }
 0x50e   :  { %v230_v26 = vadd.f32 %v1772_v19, %v228_v25 }
 0x510   :  { %v232_v29 = vrot.slane %v230_v26, 1 }
 0x512   :  { %233 = vrot.lane.b32.xlu2 %v232_v29, %s1889_s4 }
 0x56c   :  { %v234_v30 = vpop.permute.xlu2 %233 }
 0x56d   :  { %1701 = vmatmul.msk.f32.vlgmr.msrb.gmra.mxu2 %vm83_vm5, %v234_v30 }
 0x56e   :  { %634 = vmatpush.msrb.mxu2 %v1950_v1 }
 0x570   :  { %635 = vmatpush.msrb.mxu2 %v1955_v2 }
 0x572   :  { %636 = vmatpush.msrb.mxu2 %v1961_v4 }
 0x574   :  { %637 = vmatpush.msrb.mxu2 %v1974_v7 }
 0x5f0   :  { %v254_v32 = vpop.f32.mrf.mxu2 }
 0x5f1   :  { %v280_v33 = vadd.f32 %v254_v32, %v2044_v28  ;;  %v258_v35 = vrot.slane %v254_v32, 6 }
 0x5f3   :  { %v282_v34 = vrot.slane %v280_v33, 6  ;;  %v260_v36 = vadd.f32 %v258_v35, %v2048_v31 }
 0x5f5   :  { %283 = vrot.lane.b32.xlu0 %v282_v34, %s1889_s4  ;;  %v1702_v37 = vmul.f32 -1.442695, %v260_v36 }
 0x5f7   :  { %1773 = vpow2.f32 %v1702_v37 }
 0x5fd   :  { %v1774_v38 = vpop.eup %1773 }
 0x5fe   :  { %v264_v39 = vadd.f32 1.0, %v1774_v38 }
 0x600   :  { %1775 = vrcp.f32 %v264_v39  ;;  %v276_v7 = vand.u32 2147483648, %v264_v39  ;;  %vm270_vm11 = vweird.f32 %v264_v39  ;;  %v274_v42 = vand.u32 2147483647, %v264_v39 }
 0x602   :  { %v277_v44 = vor.u32 1.1754944e-38, %v276_v7  ;;  %vm275_vm13 = vcmp.eq.f32.partialorder %v274_v42, 8.507059e+37 }
 0x606   :  { %v1776_v1 = vpop.eup %1775 }
 0x607   :  { %v266_v2 = vmul.f32 %v1776_v1, %v264_v39  ;;  %vm271_vm10 = vweird.f32 %v1776_v1 }
 0x608   :  { %vm272_vm12 = vmor %vm270_vm11, %vm271_vm10 }
 0x609   :  { %v267_v40 = vsub.f32 1.0, %v266_v2 }
 0x60b   :  { %v268_v4 = vmul.f32 %v1776_v1, %v267_v40 }
 0x60d   :  { %v269_v41 = vadd.f32 %v1776_v1, %v268_v4 }
 0x60f   :  { %v273_v43 = vsel %vm272_vm12, %v1776_v1, %v269_v41 }
 0x610   :  { %v278_v46 = vsel %vm275_vm13, %v277_v44, %v273_v43 }
 0x667   :  { %v284_v45 = vpop.permute.xlu0 %283 }
 0x668   :  { %v286_v47 = vmul.f32 %v284_v45, %v278_v46 }
 0x66a   :  { %288 = vrot.lane.b32.xlu1 %v286_v47, %s1889_s4 }
 0x6dc   :  { %v289_v48 = vpop.permute.xlu1 %288 }
 0x6dd   :  { %v291_v49 = vadd.f32 %v289_v48, %v2048_v31 }
 0x6df   :  { %1777 = vtanh.f32 %v291_v49 }
 0x6e5   :  { %v1778_v50 = vpop.eup %1777 }
 0x6e6   :  { %v294_v51 = vrot.slane %v1778_v50, 1 }
 0x6e8   :  { %v296_v52 = vsub.f32 %v230_v26, %v294_v51 }
 0x6ea   :  { %v298_v53 = vrot.slane %v296_v52, 7 }
 0x6ec   :  { %299 = vrot.lane.b32.xlu2 %v298_v53, %s1891_s2 }
 0x746   :  { %v300_v54 = vpop.permute.xlu2 %299 }
 0x747   :  { %v302_v55 = vmul.f32 %v300_v54, %v278_v46 }
 0x749   :  { %304 = vrot.lane.b32.xlu0 %v302_v55, %s1892_s28 }
 0x7bb   :  { %v305_v56 = vpop.permute.xlu0 %304 }
 0x7bc   :  { %v307_v57 = vadd.f32 %v1778_v50, %v305_v56 }
 0x7be   :  { %v309_v58 = vrot.slane %v307_v57, 2 }
 0x7c0   :  { %310 = vrot.lane.b32.xlu1 %v309_v58, %s1889_s4 }
 0x832   :  { %v311_v59 = vpop.permute.xlu1 %310 }
 0x833   :  { %1703 = vmatmul.msk.f32.vlgmr.msrb.gmra.mxu1 %vm83_vm5, %v311_v59 }
 0x8b0   :  { %v331_v60 = vpop.f32.mrf.mxu1 }
 0x8b1   :  { %v357_v61 = vadd.f32 %v331_v60, %v2044_v28  ;;  %v335_v63 = vrot.slane %v331_v60, 5 }
 0x8b3   :  { %v359_v62 = vrot.slane %v357_v61, 5  ;;  %v337_v0 = vadd.f32 %v335_v63, %v2048_v31 }
 0x8b5   :  { %360 = vrot.lane.b32.xlu2 %v359_v62, %s1889_s4  ;;  %v1704_v3 = vmul.f32 -1.442695, %v337_v0 }
 0x8b7   :  { %1779 = vpow2.f32 %v1704_v3 }
 0x8bd   :  { %v1780_v5 = vpop.eup %1779 }
 0x8be   :  { %v341_v6 = vadd.f32 1.0, %v1780_v5 }
 0x8c0   :  { %1781 = vrcp.f32 %v341_v6  ;;  %v353_v13 = vand.u32 2147483648, %v341_v6  ;;  %vm347_vm15 = vweird.f32 %v341_v6  ;;  %v351_v14 = vand.u32 2147483647, %v341_v6 }
 0x8c2   :  { %v354_v16 = vor.u32 1.1754944e-38, %v353_v13  ;;  %vm352_vm1 = vcmp.eq.f32.partialorder %v351_v14, 8.507059e+37 }
 0x8c6   :  { %v1782_v8 = vpop.eup %1781 }
 0x8c7   :  { %v343_v9 = vmul.f32 %v1782_v8, %v341_v6  ;;  %vm348_vm14 = vweird.f32 %v1782_v8 }
 0x8c8   :  { %vm349_vm0 = vmor %vm347_vm15, %vm348_vm14 }
 0x8c9   :  { %v344_v10 = vsub.f32 1.0, %v343_v9 }
 0x8cb   :  { %v345_v11 = vmul.f32 %v1782_v8, %v344_v10 }
 0x8cd   :  { %v346_v12 = vadd.f32 %v1782_v8, %v345_v11 }
 0x8cf   :  { %v350_v15 = vsel %vm349_vm0, %v1782_v8, %v346_v12 }
 0x8d0   :  { %v355_v18 = vsel %vm352_vm1, %v354_v16, %v350_v15 }
 0x90f   :  { %v361_v17 = vpop.permute.xlu2 %360 }
 0x910   :  { %v363_v19 = vmul.f32 %v361_v17, %v355_v18 }
 0x912   :  { %365 = vrot.lane.b32.xlu0 %v363_v19, %s1889_s4 }
 0x984   :  { %v366_v20 = vpop.permute.xlu0 %365 }
 0x985   :  { %v368_v21 = vadd.f32 %v366_v20, %v2048_v31 }
 0x987   :  { %1783 = vtanh.f32 %v368_v21 }
 0x98d   :  { %v1784_v22 = vpop.eup %1783 }
 0x98e   :  { %v371_v23 = vrot.slane %v1784_v22, 1 }
 0x990   :  { %v373_v24 = vsub.f32 %v307_v57, %v371_v23 }
 0x992   :  { %v375_v25 = vrot.slane %v373_v24, 7 }
 0x994   :  { %376 = vrot.lane.b32.xlu1 %v375_v25, %s1891_s2 }
 0xa06   :  { %v377_v26 = vpop.permute.xlu1 %376 }
 0xa07   :  { %v379_v29 = vmul.f32 %v377_v26, %v355_v18 }
 0xa09   :  { %381 = vrot.lane.b32.xlu2 %v379_v29, %s1892_s28 }
 0xa63   :  { %v382_v30 = vpop.permute.xlu2 %381 }
 0xa64   :  { %v384_v32 = vadd.f32 %v1784_v22, %v382_v30 }
 0xa66   :  { %v386_v33 = vrot.slane %v384_v32, 3 }
 0xa68   :  { %387 = vrot.lane.b32.xlu0 %v386_v33, %s1889_s4 }
 0xada   :  { %v388_v34 = vpop.permute.xlu0 %387 }
 0xadb   :  { %1705 = vmatmul.msk.f32.vlgmr.msra.gmra.mxu2 %vm83_vm5, %v388_v34 }
 0xb5e   :  { %v408_v35 = vpop.f32.mrf.mxu2 }
 0xb5f   :  { %v434_v36 = vadd.f32 %v408_v35, %v2044_v28  ;;  %v412_v38 = vrot.slane %v408_v35, 4 }
 0xb61   :  { %v436_v37 = vrot.slane %v434_v36, 4  ;;  %v414_v39 = vadd.f32 %v412_v38, %v2048_v31 }
 0xb63   :  { %437 = vrot.lane.b32.xlu1 %v436_v37, %s1889_s4  ;;  %v1706_v1 = vmul.f32 -1.442695, %v414_v39 }
 0xb65   :  { %1785 = vpow2.f32 %v1706_v1 }
 0xb6b   :  { %v1786_v2 = vpop.eup %1785 }
 0xb6c   :  { %v418_v40 = vadd.f32 1.0, %v1786_v2 }
 0xb6e   :  { %1787 = vrcp.f32 %v418_v40  ;;  %v430_v44 = vand.u32 2147483648, %v418_v40  ;;  %vm424_vm3 = vweird.f32 %v418_v40  ;;  %v428_v45 = vand.u32 2147483647, %v418_v40 }
 0xb70   :  { %v431_v47 = vor.u32 1.1754944e-38, %v430_v44  ;;  %vm429_vm6 = vcmp.eq.f32.partialorder %v428_v45, 8.507059e+37 }
 0xb74   :  { %v1788_v4 = vpop.eup %1787 }
 0xb75   :  { %v420_v41 = vmul.f32 %v1788_v4, %v418_v40  ;;  %vm425_vm2 = vweird.f32 %v1788_v4 }
 0xb76   :  { %vm426_vm4 = vmor %vm424_vm3, %vm425_vm2 }
 0xb77   :  { %v421_v7 = vsub.f32 1.0, %v420_v41 }
 0xb79   :  { %v422_v42 = vmul.f32 %v1788_v4, %v421_v7 }
 0xb7b   :  { %v423_v43 = vadd.f32 %v1788_v4, %v422_v42 }
 0xb7d   :  { %v427_v46 = vsel %vm426_vm4, %v1788_v4, %v423_v43 }
 0xb7e   :  { %v432_v49 = vsel %vm429_vm6, %v431_v47, %v427_v46 }
 0xbd5   :  { %v438_v48 = vpop.permute.xlu1 %437 }
 0xbd6   :  { %v440_v50 = vmul.f32 %v438_v48, %v432_v49 }
 0xbd8   :  { %442 = vrot.lane.b32.xlu2 %v440_v50, %s1889_s4 }
 0xc32   :  { %v443_v51 = vpop.permute.xlu2 %442 }
 0xc33   :  { %v445_v52 = vadd.f32 %v443_v51, %v2048_v31 }
 0xc35   :  { %1789 = vtanh.f32 %v445_v52 }
 0xc3b   :  { %v1790_v53 = vpop.eup %1789 }
 0xc3c   :  { %v448_v54 = vrot.slane %v1790_v53, 1 }
 0xc3e   :  { %v450_v55 = vsub.f32 %v384_v32, %v448_v54 }
 0xc40   :  { %v452_v56 = vrot.slane %v450_v55, 7 }
 0xc42   :  { %453 = vrot.lane.b32.xlu0 %v452_v56, %s1891_s2 }
 0xcb4   :  { %v454_v57 = vpop.permute.xlu0 %453 }
 0xcb5   :  { %v456_v58 = vmul.f32 %v454_v57, %v432_v49 }
 0xcb7   :  { %458 = vrot.lane.b32.xlu1 %v456_v58, %s1892_s28 }
 0xd29   :  { %v459_v59 = vpop.permute.xlu1 %458 }
 0xd2a   :  { %v461_v60 = vadd.f32 %v1790_v53, %v459_v59 }
 0xd2c   :  { %v463_v61 = vrot.slane %v461_v60, 4 }
 0xd2e   :  { %464 = vrot.lane.b32.xlu2 %v463_v61, %s1889_s4 }
 0xd88   :  { %v465_v62 = vpop.permute.xlu2 %464 }
 0xd89   :  { %1707 = vmatmul.msk.f32.vlgmr.msra.gmra.mxu3 %vm83_vm5, %v465_v62 }
 0xe0c   :  { %v485_v63 = vpop.f32.mrf.mxu3 }
 0xe0d   :  { %v511_v0 = vadd.f32 %v485_v63, %v2044_v28  ;;  %v489_v5 = vrot.slane %v485_v63, 3 }
 0xe0f   :  { %v513_v3 = vrot.slane %v511_v0, 3  ;;  %v491_v6 = vadd.f32 %v489_v5, %v2048_v31 }
 0xe11   :  { %514 = vrot.lane.b32.xlu0 %v513_v3, %s1889_s4  ;;  %v1708_v8 = vmul.f32 -1.442695, %v491_v6 }
 0xe13   :  { %1791 = vpow2.f32 %v1708_v8 }
 0xe19   :  { %v1792_v9 = vpop.eup %1791 }
 0xe1a   :  { %v495_v10 = vadd.f32 1.0, %v1792_v9 }
 0xe1c   :  { %1793 = vrcp.f32 %v495_v10  ;;  %v507_v16 = vand.u32 2147483648, %v495_v10  ;;  %vm501_vm8 = vweird.f32 %v495_v10  ;;  %v505_v17 = vand.u32 2147483647, %v495_v10 }
 0xe1e   :  { %v508_v19 = vor.u32 1.1754944e-38, %v507_v16  ;;  %vm506_vm10 = vcmp.eq.f32.partialorder %v505_v17, 8.507059e+37 }
 0xe22   :  { %v1794_v11 = vpop.eup %1793 }
 0xe23   :  { %v497_v12 = vmul.f32 %v1794_v11, %v495_v10  ;;  %vm502_vm7 = vweird.f32 %v1794_v11 }
 0xe24   :  { %vm503_vm9 = vmor %vm501_vm8, %vm502_vm7  ;;  %vm842_vm8 = vcmask 1040384  }
 0xe25   :  { %v498_v13 = vsub.f32 1.0, %v497_v12 }
 0xe27   :  { %v499_v14 = vmul.f32 %v1794_v11, %v498_v13 }
 0xe29   :  { %v500_v15 = vadd.f32 %v1794_v11, %v499_v14 }
 0xe2b   :  { %v504_v18 = vsel %vm503_vm9, %v1794_v11, %v500_v15 }
 0xe2c   :  { %v509_v21 = vsel %vm506_vm10, %v508_v19, %v504_v18 }
 0xe83   :  { %v515_v20 = vpop.permute.xlu0 %514 }
 0xe84   :  { %v517_v22 = vmul.f32 %v515_v20, %v509_v21 }
 0xe86   :  { %519 = vrot.lane.b32.xlu1 %v517_v22, %s1889_s4 }
 0xef8   :  { %v520_v23 = vpop.permute.xlu1 %519 }
 0xef9   :  { %v522_v24 = vadd.f32 %v520_v23, %v2048_v31 }
 0xefb   :  { %1795 = vtanh.f32 %v522_v24 }
 0xf01   :  { %v1796_v25 = vpop.eup %1795 }
 0xf02   :  { %v525_v26 = vrot.slane %v1796_v25, 1 }
 0xf04   :  { %v527_v29 = vsub.f32 %v461_v60, %v525_v26 }
 0xf06   :  { %v529_v30 = vrot.slane %v527_v29, 7 }
 0xf08   :  { %530 = vrot.lane.b32.xlu2 %v529_v30, %s1891_s2 }
 0xf62   :  { %v531_v32 = vpop.permute.xlu2 %530 }
 0xf63   :  { %v533_v33 = vmul.f32 %v531_v32, %v509_v21 }
 0xf65   :  { %535 = vrot.lane.b32.xlu0 %v533_v33, %s1892_s28 }
 0xfd7   :  { %v536_v34 = vpop.permute.xlu0 %535 }
 0xfd8   :  { %v538_v35 = vadd.f32 %v1796_v25, %v536_v34 }
 0xfda   :  { %v540_v36 = vrot.slane %v538_v35, 5 }
 0xfdc   :  { %541 = vrot.lane.b32.xlu1 %v540_v36, %s1889_s4  ;;  %v2132_v36 = vld [vmem:[%s2599_s5 + $0x78] sm:$0xff] }
 0xfdd   :  { %726 = vmatpush.msrb.mxu3 %v2132_v36  ;;  %849 = vmatpush.msrb.mxu0 %v2132_v36 }
0x104e   :  { %v542_v37 = vpop.permute.xlu1 %541 }
0x104f   :  { %1709 = vmatmul.msk.f32.vlgmr.msra.gmra.mxu1 %vm83_vm5, %v542_v37  ;;  %v2144_v37 = vld [vmem:[%s2599_s5 + $0x68] sm:$0xff] }
0x10cc   :  { %v562_v38 = vpop.f32.mrf.mxu1 }
0x10cd   :  { %v588_v39 = vadd.f32 %v562_v38, %v2044_v28  ;;  %v566_v2 = vrot.slane %v562_v38, 2  ;;  %v2151_v38 = vld [vmem:[%s2599_s5 + $0x60] sm:$0xff] }
0x10cf   :  { %v590_v1 = vrot.slane %v588_v39, 2  ;;  %v568_v40 = vadd.f32 %v566_v2, %v2048_v31  ;;  %v2157_v39 = vld [vmem:[%s2599_s5 + $0x98] sm:$0xff]  ;;  %v2169_v2 = vld [vmem:[%s2599_s5 + $0x90] sm:$0xff] }
0x10d0   :  { %758 = vmatpush.msrb.mxu1 %v2157_v39 }
0x10d1   :  { %591 = vrot.lane.b32.xlu2 %v590_v1, %s1889_s4  ;;  %v1710_v4 = vmul.f32 -1.442695, %v568_v40  ;;  %v2163_v1 = vld [vmem:[%s2599_s5 + $0x58] sm:$0xff]  ;;  %v2175_v40 = vld [vmem:[%s2599_s5 + $0x88] sm:$0xff] }
0x10d2   :  { %759 = vmatpush.msrb.mxu1 %v2169_v2 }
0x10d3   :  { %1797 = vpow2.f32 %v1710_v4  ;;  %v2181_v4 = vld [vmem:[%s2599_s5 + $0x50] sm:$0xff] }
0x10d4   :  { %760 = vmatpush.msrb.mxu1 %v2175_v40 }
0x10d9   :  { %v1798_v41 = vpop.eup %1797 }
0x10da   :  { %v572_v7 = vadd.f32 1.0, %v1798_v41  ;;  %v2188_v41 = vld [vmem:[%s2599_s5 + $0x80] sm:$0xff] }
0x10db   :  { %761 = vmatpush.msrb.mxu1 %v2188_v41 }
0x10dc   :  { %1799 = vrcp.f32 %v572_v7  ;;  %v584_v47 = vand.u32 2147483648, %v572_v7  ;;  %vm578_vm12 = vweird.f32 %v572_v7  ;;  %v582_v48 = vand.u32 2147483647, %v572_v7 }
0x10dd   :  { %881 = vmatpush.msra.mxu1 %v2157_v39 }
0x10de   :  { %v585_v50 = vor.u32 1.1754944e-38, %v584_v47  ;;  %vm583_vm14 = vcmp.eq.f32.partialorder %v582_v48, 8.507059e+37  ;;  %v2241_v47 = vld [vmem:[%s2599_s5 + $0x18] sm:$0xff]  ;;  %v2248_v48 = vld [vmem:[%s2599_s5 + $0x10] sm:$0xff] }
0x10df   :  { %882 = vmatpush.msra.mxu1 %v2169_v2 }
0x10e1   :  { %883 = vmatpush.msra.mxu1 %v2175_v40 }
0x10e2   :  { %v1800_v42 = vpop.eup %1799 }
0x10e3   :  { %v574_v43 = vmul.f32 %v1800_v42, %v572_v7  ;;  %vm579_vm11 = vweird.f32 %v1800_v42  ;;  %v2194_v7 = vld [vmem:[%s2599_s5 + $0x48] sm:$0xff]  ;;  %884 = vmatpush.msra.mxu1 %v2188_v41 }
0x10e4   :  { %vm580_vm13 = vmor %vm578_vm12, %vm579_vm11 }
0x10e5   :  { %v575_v44 = vsub.f32 1.0, %v574_v43  ;;  %v2210_v43 = vld [vmem:[%s2599_s5 + $0x38] sm:$0xff] }
0x10e7   :  { %v576_v45 = vmul.f32 %v1800_v42, %v575_v44  ;;  %v2218_v44 = vld [vmem:[%s2599_s5 + $0x30] sm:$0xff] }
0x10e9   :  { %v577_v46 = vadd.f32 %v1800_v42, %v576_v45  ;;  %v2226_v45 = vld [vmem:[%s2599_s5 + $0x28] sm:$0xff] }
0x10eb   :  { %v581_v49 = vsel %vm580_vm13, %v1800_v42, %v577_v46  ;;  %v2202_v42 = vld [vmem:[%s2599_s5 + $0x40] sm:$0xff] }
0x10ec   :  { %v586_v52 = vsel %vm583_vm14, %v585_v50, %v581_v49  ;;  %v2234_v46 = vld [vmem:[%s2599_s5 + $0x20] sm:$0xff]  ;;  %v2255_v49 = vld [vmem:[%s2599_s5 + $0x8] sm:$0xff] }
0x112b   :  { %v592_v51 = vpop.permute.xlu2 %591 }
0x112c   :  { %v594_v53 = vmul.f32 %v592_v51, %v586_v52 }
0x112e   :  { %596 = vrot.lane.b32.xlu0 %v594_v53, %s1889_s4  ;;  %v719_v53 = vld [vmem:[%s2595_s1] sm:$0x1] }
0x11a0   :  { %v597_v54 = vpop.permute.xlu0 %596 }
0x11a1   :  { %v599_v55 = vadd.f32 %v597_v54, %v2048_v31 }
0x11a3   :  { %1801 = vtanh.f32 %v599_v55  ;;  %v1760_v55 = vld [vmem:[%s2600_s6] ss:$0 sm:$0xff] }
0x11a9   :  { %v1802_v56 = vpop.eup %1801 }
0x11aa   :  { %v602_v57 = vrot.slane %v1802_v56, 1 }
0x11ac   :  { %v604_v58 = vsub.f32 %v538_v35, %v602_v57 }
0x11ae   :  { %v606_v59 = vrot.slane %v604_v58, 7 }
0x11b0   :  { %607 = vrot.lane.b32.xlu1 %v606_v59, %s1891_s2 }
0x1222   :  { %v608_v60 = vpop.permute.xlu1 %607 }
0x1223   :  { %v610_v61 = vmul.f32 %v608_v60, %v586_v52  ;;  %v2265_v52 = vld [vmem:[%s2599_s5] sm:$0xff] }
0x1225   :  { %612 = vrot.lane.b32.xlu2 %v610_v61, %s1892_s28 }
0x127f   :  { %v613_v62 = vpop.permute.xlu2 %612 }
0x1280   :  { %v615_v63 = vadd.f32 %v1802_v56, %v613_v62 }
0x1282   :  { %v617_v0 = vrot.slane %v615_v63, 6 }
0x1284   :  { %618 = vrot.lane.b32.xlu0 %v617_v0, %s1889_s4 }
0x12f6   :  { %v619_v3 = vpop.permute.xlu0 %618 }
0x12f7   :  { %1711 = vmatmul.msk.f32.vlgmr.msrb.gmra.mxu2 %vm83_vm5, %v619_v3 }
0x137a   :  { %v639_v5 = vpop.f32.mrf.mxu2 }
0x137b   :  { %v665_v6 = vadd.f32 %v639_v5, %v2044_v28  ;;  %v643_v9 = vrot.slane %v639_v5, 1 }
0x137d   :  { %v667_v8 = vrot.slane %v665_v6, 1  ;;  %v645_v10 = vadd.f32 %v643_v9, %v2048_v31 }
0x137f   :  { %668 = vrot.lane.b32.xlu1 %v667_v8, %s1889_s4  ;;  %v1712_v11 = vmul.f32 -1.442695, %v645_v10 }
0x1381   :  { %1803 = vpow2.f32 %v1712_v11 }
0x1387   :  { %v1804_v12 = vpop.eup %1803 }
0x1388   :  { %v649_v13 = vadd.f32 1.0, %v1804_v12 }
0x138a   :  { %1805 = vrcp.f32 %v649_v13  ;;  %v661_v19 = vand.u32 2147483648, %v649_v13  ;;  %vm655_vm0 = vweird.f32 %v649_v13  ;;  %v659_v28 = vand.u32 2147483647, %v649_v13 }
0x138c   :  { %v662_v21 = vor.u32 1.1754944e-38, %v661_v19  ;;  %vm660_vm2 = vcmp.eq.f32.partialorder %v659_v28, 8.507059e+37 }
0x1390   :  { %v1806_v14 = vpop.eup %1805 }
0x1391   :  { %v651_v15 = vmul.f32 %v1806_v14, %v649_v13  ;;  %vm656_vm15 = vweird.f32 %v1806_v14 }
0x1392   :  { %vm657_vm1 = vmor %vm655_vm0, %vm656_vm15 }
0x1393   :  { %v652_v16 = vsub.f32 1.0, %v651_v15 }
0x1395   :  { %v653_v17 = vmul.f32 %v1806_v14, %v652_v16 }
0x1397   :  { %v654_v18 = vadd.f32 %v1806_v14, %v653_v17 }
0x1399   :  { %v658_v20 = vsel %vm657_vm1, %v1806_v14, %v654_v18 }
0x139a   :  { %v663_v23 = vsel %vm660_vm2, %v662_v21, %v658_v20 }
0x13f1   :  { %v669_v22 = vpop.permute.xlu1 %668 }
0x13f2   :  { %v671_v24 = vmul.f32 %v669_v22, %v663_v23 }
0x13f4   :  { %673 = vrot.lane.b32.xlu2 %v671_v24, %s1889_s4  ;;  %v2325_v24 = vld [vmem:[%s2601_s7 + $0x18] sm:$0xff] }
0x13f5   :  { %834 = vmatpush.msra.mxu2 %v2325_v24 }
0x144e   :  { %v674_v25 = vpop.permute.xlu2 %673 }
0x144f   :  { %v676_v26 = vadd.f32 %v674_v25, %v2048_v31  ;;  %v2137_v31 = vld [vmem:[%s2599_s5 + $0x70] sm:$0xff] }
0x1450   :  { %727 = vmatpush.msrb.mxu3 %v2137_v31  ;;  %850 = vmatpush.msrb.mxu0 %v2137_v31  ;;  %v2330_v25 = vld [vmem:[%s2601_s7 + $0x10] sm:$0xff] }
0x1451   :  { %1807 = vtanh.f32 %v676_v26  ;;  %v2337_v26 = vld [vmem:[%s2601_s7 + $0x8] sm:$0xff]  ;;  %835 = vmatpush.msra.mxu2 %v2330_v25 }
0x1452   :  { %728 = vmatpush.msrb.mxu3 %v2144_v37  ;;  %851 = vmatpush.msrb.mxu0 %v2144_v37 }
0x1453   :  { %836 = vmatpush.msra.mxu2 %v2337_v26 }
0x1454   :  { %729 = vmatpush.msrb.mxu3 %v2151_v38  ;;  %852 = vmatpush.msrb.mxu0 %v2151_v38 }
0x1456   :  { %730 = vmatpush.msrb.mxu3 %v2163_v1  ;;  %853 = vmatpush.msrb.mxu0 %v2163_v1 }
0x1457   :  { %v2124_v29 = vpop.eup %1807 }
0x1458   :  { %v679_v30 = vrot.slane %v2124_v29, 1  ;;  %731 = vmatpush.msrb.mxu3 %v2181_v4  ;;  %854 = vmatpush.msrb.mxu0 %v2181_v4 }
0x145a   :  { %v681_v32 = vsub.f32 %v615_v63, %v679_v30  ;;  %732 = vmatpush.msrb.mxu3 %v2194_v7  ;;  %855 = vmatpush.msrb.mxu0 %v2194_v7 }
0x145c   :  { %v683_v33 = vrot.slane %v681_v32, 7  ;;  %733 = vmatpush.msrb.mxu3 %v2202_v42  ;;  %856 = vmatpush.msrb.mxu0 %v2202_v42 }
0x145e   :  { %684 = vrot.lane.b32.xlu0 %v683_v33, %s1891_s2  ;;  %734 = vmatpush.msrb.mxu3 %v2210_v43 }
0x145f   :  { %857 = vmatpush.msrb.mxu0 %v2210_v43 }
0x1460   :  { %735 = vmatpush.msrb.mxu3 %v2218_v44 }
0x1461   :  { %858 = vmatpush.msrb.mxu0 %v2218_v44 }
0x1462   :  { %736 = vmatpush.msrb.mxu3 %v2226_v45 }
0x1463   :  { %859 = vmatpush.msrb.mxu0 %v2226_v45 }
0x1464   :  { %737 = vmatpush.msrb.mxu3 %v2234_v46 }
0x1465   :  { %860 = vmatpush.msrb.mxu0 %v2234_v46 }
0x1466   :  { %738 = vmatpush.msrb.mxu3 %v2241_v47  ;;  %787 = vrot.lane.b32.xlu0 %v1760_v55, %s1891_s2 }
0x1467   :  { %861 = vmatpush.msrb.mxu0 %v2241_v47 }
0x1468   :  { %739 = vmatpush.msrb.mxu3 %v2248_v48 }
0x1469   :  { %862 = vmatpush.msrb.mxu0 %v2248_v48 }
0x146a   :  { %740 = vmatpush.msrb.mxu3 %v2255_v49 }
0x146b   :  { %863 = vmatpush.msrb.mxu0 %v2255_v49 }
0x146c   :  { %741 = vmatpush.msrb.mxu3 %v2265_v52 }
0x146d   :  { %742 = vmatmul.f32.vlgmr.msrb.gmra.mxu3 %v719_v53  ;;  %864 = vmatpush.msrb.mxu0 %v2265_v52 }
0x146e   :  { %1075 = vmatpush.msra.mxu3 %v2132_v36 }
0x146f   :  { %1174 = vmatpush.msra.mxu0 %v2325_v24 }
0x1470   :  { %1076 = vmatpush.msra.mxu3 %v2137_v31 }
0x1471   :  { %1175 = vmatpush.msra.mxu0 %v2330_v25 }
0x1472   :  { %1077 = vmatpush.msra.mxu3 %v2144_v37 }
0x1473   :  { %1176 = vmatpush.msra.mxu0 %v2337_v26 }
0x1474   :  { %1078 = vmatpush.msra.mxu3 %v2151_v38 }
0x1476   :  { %1079 = vmatpush.msra.mxu3 %v2163_v1 }
0x1478   :  { %1080 = vmatpush.msra.mxu3 %v2181_v4 }
0x147a   :  { %1081 = vmatpush.msra.mxu3 %v2194_v7 }
0x147c   :  { %1082 = vmatpush.msra.mxu3 %v2202_v42 }
0x147e   :  { %1083 = vmatpush.msra.mxu3 %v2210_v43 }
0x1480   :  { %1084 = vmatpush.msra.mxu3 %v2218_v44 }
0x1482   :  { %1085 = vmatpush.msra.mxu3 %v2226_v45 }
0x1484   :  { %1086 = vmatpush.msra.mxu3 %v2234_v46 }
0x1486   :  { %1087 = vmatpush.msra.mxu3 %v2241_v47 }
0x1488   :  { %1088 = vmatpush.msra.mxu3 %v2248_v48 }
0x148a   :  { %1089 = vmatpush.msra.mxu3 %v2255_v49 }
0x148c   :  { %1090 = vmatpush.msra.mxu3 %v2265_v52 }
0x148e   :  { %1400 = vmatpush.msrb.mxu3 %v2325_v24 }
0x1490   :  { %1401 = vmatpush.msrb.mxu3 %v2330_v25 }
0x1492   :  { %1402 = vmatpush.msrb.mxu3 %v2337_v26 }
0x14d0   :  { %v685_v34 = vpop.permute.xlu0 %684 }
0x14d1   :  { %v687_v35 = vmul.f32 %v685_v34, %v663_v23  ;;  %v2372_v34 = vld [vmem:[%s2602_s8] sm:$0x1]  ;;  %s1893_s8 = smov [#allocation2]  }
0x14d3   :  { %689 = vrot.lane.b32.xlu1 %v687_v35, %s1892_s28 }
0x14d8   :  { %v2314_v59 = vpop.permute.xlu0 %787 }
0x14f0   :  { %v743_v57 = vpop.f32.mrf.mxu3 }
0x1545   :  { %v690_v50 = vpop.permute.xlu1 %689 }
0x1546   :  { %v2260_v51 = vadd.f32 %v2124_v29, %v690_v50  ;;  %v2345_v29 = vld [vmem:[%s2601_s7] sm:$0xff] }
0x1547   :  { %837 = vmatpush.msra.mxu2 %v2345_v29  ;;  %1177 = vmatpush.msra.mxu0 %v2345_v29 }
0x1548   :  { %v721_v54 = vrot.slane %v2260_v51, 7  ;;  %1403 = vmatpush.msrb.mxu3 %v2345_v29 }
0x1549   :  { %948 = vmatpush.msrb.mxu2 %v2325_v24 }
0x154a   :  { %722 = vrot.lane.b32.xlu2 %v721_v54, %s1889_s4 }
0x154b   :  { %949 = vmatpush.msrb.mxu2 %v2330_v25 }
0x154d   :  { %950 = vmatpush.msrb.mxu2 %v2337_v26 }
0x154f   :  { %951 = vmatpush.msrb.mxu2 %v2345_v29 }
0x15a4   :  { %v723_v56 = vpop.permute.xlu2 %722 }
0x15a5   :  { %1713 = vmatmul.msk.f32.vlgmr.msrb.gmra.mxu1 %vm83_vm5, %v723_v56 }
0x15a6   :  { %962 = vmatpush.msrb.mxu1 %v2132_v36 }
0x15a8   :  { %963 = vmatpush.msrb.mxu1 %v2137_v31 }
0x15aa   :  { %964 = vmatpush.msrb.mxu1 %v2144_v37 }
0x15ac   :  { %965 = vmatpush.msrb.mxu1 %v2151_v38 }
0x15ae   :  { %966 = vmatpush.msrb.mxu1 %v2163_v1 }
0x15b0   :  { %967 = vmatpush.msrb.mxu1 %v2181_v4 }
0x15b2   :  { %968 = vmatpush.msrb.mxu1 %v2194_v7 }
0x15b4   :  { %969 = vmatpush.msrb.mxu1 %v2202_v42 }
0x15b6   :  { %970 = vmatpush.msrb.mxu1 %v2210_v43 }
0x15b8   :  { %971 = vmatpush.msrb.mxu1 %v2218_v44 }
0x15ba   :  { %972 = vmatpush.msrb.mxu1 %v2226_v45 }
0x15bc   :  { %973 = vmatpush.msrb.mxu1 %v2234_v46 }
0x15be   :  { %974 = vmatpush.msrb.mxu1 %v2241_v47 }
0x15c0   :  { %975 = vmatpush.msrb.mxu1 %v2248_v48 }
0x15c2   :  { %976 = vmatpush.msrb.mxu1 %v2255_v49 }
0x15c4   :  { %977 = vmatpush.msrb.mxu1 %v2265_v52 }
0x1622   :  { %v763_v58 = vpop.f32.mrf.mxu1 }
0x1623   :  { %v764_v60 = vadd.f32 %v763_v58, %v743_v57 }
0x1625   :  { %v790_v61 = vadd.f32 %v2314_v59, %v764_v60  ;;  %v1714_v62 = vmul.f32 -1.442695, %v764_v60 }
0x1627   :  { %792 = vrot.lane.b32.xlu1 %v790_v61, %s1892_s28  ;;  %1809 = vpow2.f32 %v1714_v62 }
0x162d   :  { %v1810_v63 = vpop.eup %1809 }
0x162e   :  { %v769_v0 = vadd.f32 1.0, %v1810_v63 }
0x1630   :  { %1811 = vrcp.f32 %v769_v0  ;;  %v781_v10 = vand.u32 2147483648, %v769_v0  ;;  %vm775_vm4 = vweird.f32 %v769_v0  ;;  %v779_v11 = vand.u32 2147483647, %v769_v0 }
0x1632   :  { %v782_v13 = vor.u32 1.1754944e-38, %v781_v10  ;;  %vm780_vm7 = vcmp.eq.f32.partialorder %v779_v11, 8.507059e+37 }
0x1636   :  { %v1812_v3 = vpop.eup %1811 }
0x1637   :  { %v771_v5 = vmul.f32 %v1812_v3, %v769_v0  ;;  %vm776_vm3 = vweird.f32 %v1812_v3 }
0x1638   :  { %vm777_vm6 = vmor %vm775_vm4, %vm776_vm3 }
0x1639   :  { %v772_v6 = vsub.f32 1.0, %v771_v5 }
0x163b   :  { %v773_v8 = vmul.f32 %v1812_v3, %v772_v6 }
0x163d   :  { %v774_v9 = vadd.f32 %v1812_v3, %v773_v8 }
0x163f   :  { %v778_v12 = vsel %vm777_vm6, %v1812_v3, %v774_v9 }
0x1640   :  { %v783_v14 = vsel %vm780_vm7, %v782_v13, %v778_v12 }
0x1699   :  { %v793_v15 = vpop.permute.xlu1 %792 }
0x169a   :  { %v795_v16 = vmul.f32 %v793_v15, %v783_v14 }
0x169c   :  { %797 = vrot.lane.b32.xlu2 %v795_v16, %s1889_s4 }
0x16f6   :  { %v798_v17 = vpop.permute.xlu2 %797 }
0x16f7   :  { %v800_v18 = vadd.f32 %v798_v17, %v764_v60 }
0x16f9   :  { %1813 = vtanh.f32 %v800_v18 }
0x16ff   :  { %v1814_v19 = vpop.eup %1813 }
0x1700   :  { %v803_v28 = vrot.slane %v1814_v19, 1 }
0x1702   :  { %v805_v20 = vsub.f32 %v2260_v51, %v803_v28 }
0x1704   :  { %v807_v21 = vrot.slane %v805_v20, 7 }
0x1706   :  { %808 = vrot.lane.b32.xlu0 %v807_v21, %s1891_s2 }
0x1778   :  { %v809_v22 = vpop.permute.xlu0 %808 }
0x1779   :  { %v811_v23 = vmul.f32 %v809_v22, %v783_v14 }
0x177b   :  { %813 = vrot.lane.b32.xlu1 %v811_v23, %s1892_s28 }
0x17ed   :  { %v814_v30 = vpop.permute.xlu1 %813 }
0x17ee   :  { %v816_v32 = vadd.f32 %v1814_v19, %v814_v30 }
0x17f0   :  { %818 = vrot.lane.b32.xlu2 %v816_v32, %s1889_s4 }
0x184a   :  { %v819_v33 = vpop.permute.xlu2 %818 }
0x184b   :  { %1715 = vmatmul.msk.f32.vlgmr.msra.gmra.mxu2 %vm83_vm5, %v819_v33  ;;  %1718 = vmatmul.msk.f32.vlgmr.msra.gmra.mxu1 %vm83_vm5, %v819_v33 }
0x184c   :  { %994 = vmatpush.msra.mxu2 %v2157_v39  ;;  %1287 = vmatpush.msra.mxu1 %v2325_v24 }
0x184e   :  { %995 = vmatpush.msra.mxu2 %v2169_v2  ;;  %1288 = vmatpush.msra.mxu1 %v2330_v25 }
0x1850   :  { %996 = vmatpush.msra.mxu2 %v2175_v40  ;;  %1289 = vmatpush.msra.mxu1 %v2337_v26 }
0x1852   :  { %997 = vmatpush.msra.mxu2 %v2188_v41  ;;  %1290 = vmatpush.msra.mxu1 %v2345_v29 }
0x18c8   :  { %v886_v54 = vpop.f32.mrf.mxu1 }
0x18ce   :  { %v839_v35 = vpop.f32.mrf.mxu2 }
0x18cf   :  { %v2375_v50 = vadd.f32 %v839_v35, %v2372_v34 }
0x18d1   :  { %v843_v51 = vsel %vm842_vm8, %v2375_v50, -inf }
0x18d2   :  { %844 = vmax.xlane.f32.xlu0 %v843_v51 }
0x1945   :  { %v845_v53 = vpop.xlane.xlu0 %844 }
0x1946   :  { %vm846_vm9 = vcmp.eq.f32.partialorder %v2375_v50, %v845_v53 }
0x1947   :  { %1717 = vmatmul.msk.f32.vlgmr.msrb.gmra.mxu0 %vm846_vm9, %v1890_v27 }
0x1948   :  { %1220 = vmatpush.msrb.mxu0 %v2157_v39 }
0x194a   :  { %1221 = vmatpush.msrb.mxu0 %v2169_v2 }
0x194c   :  { %1222 = vmatpush.msrb.mxu0 %v2175_v40 }
0x194e   :  { %1223 = vmatpush.msrb.mxu0 %v2188_v41 }
0x19c4   :  { %v866_v55 = vpop.f32.mrf.mxu0 }
0x19c5   :  { %v887_v56 = vadd.f32 %v886_v54, %v866_v55 }
0x19c7   :  { %v908_v57 = vadd.f32 %v887_v56, %v2314_v59  ;;  %v1719_v58 = vmul.f32 -1.442695, %v887_v56 }
0x19c9   :  { %910 = vrot.lane.b32.xlu1 %v908_v57, %s1892_s28  ;;  %1815 = vpow2.f32 %v1719_v58 }
0x19cf   :  { %v1816_v60 = vpop.eup %1815 }
0x19d0   :  { %v892_v61 = vadd.f32 1.0, %v1816_v60 }
0x19d2   :  { %1817 = vrcp.f32 %v892_v61  ;;  %v904_v6 = vand.u32 2147483648, %v892_v61  ;;  %vm898_vm11 = vweird.f32 %v892_v61  ;;  %v902_v8 = vand.u32 2147483647, %v892_v61 }
0x19d4   :  { %v905_v10 = vor.u32 1.1754944e-38, %v904_v6  ;;  %vm903_vm13 = vcmp.eq.f32.partialorder %v902_v8, 8.507059e+37 }
0x19d8   :  { %v1818_v62 = vpop.eup %1817 }
0x19d9   :  { %v894_v63 = vmul.f32 %v1818_v62, %v892_v61  ;;  %vm899_vm10 = vweird.f32 %v1818_v62 }
0x19da   :  { %vm900_vm12 = vmor %vm898_vm11, %vm899_vm10 }
0x19db   :  { %v895_v0 = vsub.f32 1.0, %v894_v63 }
0x19dd   :  { %v896_v3 = vmul.f32 %v1818_v62, %v895_v0 }
0x19df   :  { %v897_v5 = vadd.f32 %v1818_v62, %v896_v3 }
0x19e1   :  { %v901_v9 = vsel %vm900_vm12, %v1818_v62, %v897_v5 }
0x19e2   :  { %v906_v12 = vsel %vm903_vm13, %v905_v10, %v901_v9 }
0x1a3b   :  { %v911_v11 = vpop.permute.xlu1 %910 }
0x1a3c   :  { %v913_v13 = vmul.f32 %v911_v11, %v906_v12 }
0x1a3e   :  { %915 = vrot.lane.b32.xlu2 %v913_v13, %s1889_s4 }
0x1a98   :  { %v916_v14 = vpop.permute.xlu2 %915 }
0x1a99   :  { %v918_v15 = vadd.f32 %v916_v14, %v887_v56 }
0x1a9b   :  { %1819 = vtanh.f32 %v918_v15 }
0x1aa1   :  { %v1820_v16 = vpop.eup %1819 }
0x1aa2   :  { %v920_v17 = vsub.f32 %v816_v32, %v1820_v16 }
0x1aa4   :  { %922 = vrot.lane.b32.xlu1 %v920_v17, %s1891_s2 }
0x1b16   :  { %v923_v18 = vpop.permute.xlu1 %922 }
0x1b17   :  { %v925_v19 = vmul.f32 %v923_v18, %v906_v12 }
0x1b19   :  { %927 = vrot.lane.b32.xlu2 %v925_v19, %s1892_s28 }
0x1b73   :  { %v928_v28 = vpop.permute.xlu2 %927 }
0x1b74   :  { %v930_v20 = vadd.f32 %v1820_v16, %v928_v28 }
0x1b76   :  { %932 = vrot.lane.b32.xlu1 %v930_v20, %s1889_s4 }
0x1be8   :  { %v933_v21 = vpop.permute.xlu1 %932 }
0x1be9   :  { %1720 = vmatmul.msk.f32.vlgmr.msrb.gmra.mxu2 %vm83_vm5, %v933_v21 }
0x1bea   :  { %1061 = vmatpush.msrb.mxu2 %v2325_v24 }
0x1bec   :  { %1062 = vmatpush.msrb.mxu2 %v2330_v25 }
0x1bee   :  { %1063 = vmatpush.msrb.mxu2 %v2337_v26 }
0x1bf0   :  { %1064 = vmatpush.msrb.mxu2 %v2345_v29 }
0x1bf1   :  { %1723 = vmatmul.msk.f32.vlgmr.msra.gmra.mxu2 %vm83_vm5, %v933_v21 }
0x1bf2   :  { %1107 = vmatpush.msra.mxu2 %v2157_v39 }
0x1bf4   :  { %1108 = vmatpush.msra.mxu2 %v2169_v2 }
0x1bf6   :  { %1109 = vmatpush.msra.mxu2 %v2175_v40 }
0x1bf8   :  { %1110 = vmatpush.msra.mxu2 %v2188_v41 }
0x1c6c   :  { %v953_v22 = vpop.f32.mrf.mxu2 }
0x1c6d   :  { %v2402_v23 = vadd.f32 %v953_v22, %v2372_v34 }
0x1c6f   :  { %v956_v30 = vsel %vm842_vm8, %v2402_v23, -inf }
0x1c70   :  { %957 = vmax.xlane.f32.xlu2 %v956_v30 }
0x1c74   :  { %v999_v33 = vpop.f32.mrf.mxu2 }
0x1ce3   :  { %v958_v32 = vpop.xlane.xlu2 %957 }
0x1ce4   :  { %vm959_vm14 = vcmp.eq.f32.partialorder %v2402_v23, %v958_v32 }
0x1ce5   :  { %1722 = vmatmul.msk.f32.vlgmr.msrb.gmra.mxu1 %vm959_vm14, %v1890_v27 }
0x1ce6   :  { %1333 = vmatpush.msrb.mxu1 %v2157_v39 }
0x1ce8   :  { %1334 = vmatpush.msrb.mxu1 %v2169_v2 }
0x1cea   :  { %1335 = vmatpush.msrb.mxu1 %v2175_v40 }
0x1cec   :  { %1336 = vmatpush.msrb.mxu1 %v2188_v41 }
0x1d62   :  { %v979_v35 = vpop.f32.mrf.mxu1 }
0x1d63   :  { %v1000_v51 = vadd.f32 %v999_v33, %v979_v35 }
0x1d65   :  { %v1021_v53 = vadd.f32 %v1000_v51, %v2314_v59  ;;  %v1724_v54 = vmul.f32 -1.442695, %v1000_v51 }
0x1d67   :  { %1023 = vrot.lane.b32.xlu1 %v1021_v53, %s1892_s28  ;;  %1821 = vpow2.f32 %v1724_v54 }
0x1d6d   :  { %v1822_v55 = vpop.eup %1821 }
0x1d6e   :  { %v1005_v56 = vadd.f32 1.0, %v1822_v55 }
0x1d70   :  { %1823 = vrcp.f32 %v1005_v56  ;;  %v1017_v63 = vand.u32 2147483648, %v1005_v56  ;;  %vm1011_vm0 = vweird.f32 %v1005_v56  ;;  %v1015_v0 = vand.u32 2147483647, %v1005_v56 }
0x1d72   :  { %v1018_v5 = vor.u32 1.1754944e-38, %v1017_v63  ;;  %vm1016_vm2 = vcmp.eq.f32.partialorder %v1015_v0, 8.507059e+37 }
0x1d76   :  { %v1824_v57 = vpop.eup %1823 }
0x1d77   :  { %v1007_v58 = vmul.f32 %v1824_v57, %v1005_v56  ;;  %vm1012_vm15 = vweird.f32 %v1824_v57 }
0x1d78   :  { %vm1013_vm1 = vmor %vm1011_vm0, %vm1012_vm15 }
0x1d79   :  { %v1008_v60 = vsub.f32 1.0, %v1007_v58 }
0x1d7b   :  { %v1009_v61 = vmul.f32 %v1824_v57, %v1008_v60 }
0x1d7d   :  { %v1010_v62 = vadd.f32 %v1824_v57, %v1009_v61 }
0x1d7f   :  { %v1014_v3 = vsel %vm1013_vm1, %v1824_v57, %v1010_v62 }
0x1d80   :  { %v1019_v8 = vsel %vm1016_vm2, %v1018_v5, %v1014_v3 }
0x1dd9   :  { %v1024_v6 = vpop.permute.xlu1 %1023 }
0x1dda   :  { %v1026_v9 = vmul.f32 %v1024_v6, %v1019_v8 }
0x1ddc   :  { %1028 = vrot.lane.b32.xlu1 %v1026_v9, %s1889_s4 }
0x1e4e   :  { %v1029_v10 = vpop.permute.xlu1 %1028 }
0x1e4f   :  { %v1031_v11 = vadd.f32 %v1029_v10, %v1000_v51 }
0x1e51   :  { %1825 = vtanh.f32 %v1031_v11 }
0x1e57   :  { %v1826_v12 = vpop.eup %1825 }
0x1e58   :  { %v1033_v13 = vsub.f32 %v930_v20, %v1826_v12 }
0x1e5a   :  { %1035 = vrot.lane.b32.xlu1 %v1033_v13, %s1891_s2 }
0x1ecc   :  { %v1036_v14 = vpop.permute.xlu1 %1035 }
0x1ecd   :  { %v1038_v15 = vmul.f32 %v1036_v14, %v1019_v8 }
0x1ecf   :  { %1040 = vrot.lane.b32.xlu0 %v1038_v15, %s1892_s28 }
0x1f41   :  { %v1041_v16 = vpop.permute.xlu0 %1040 }
0x1f42   :  { %v2417_v17 = vadd.f32 %v1826_v12, %v1041_v16 }
0x1f44   :  { %1045 = vrot.lane.b32.xlu1 %v2417_v17, %s1889_s4 }
0x1fb6   :  { %v1046_v18 = vpop.permute.xlu1 %1045 }
0x1fb7   :  { %1725 = vmatmul.msk.f32.vlgmr.msrb.gmra.mxu2 %vm83_vm5, %v1046_v18 }
0x1fb8   :  { %1188 = vmatpush.msrb.mxu2 %v2132_v36 }
0x1fba   :  { %1189 = vmatpush.msrb.mxu2 %v2137_v31 }
0x1fbc   :  { %1190 = vmatpush.msrb.mxu2 %v2144_v37 }
0x1fbe   :  { %1191 = vmatpush.msrb.mxu2 %v2151_v38 }
0x1fbf   :  { %1728 = vmatmul.msk.f32.vlgmr.msra.gmra.mxu2 %vm83_vm5, %v1046_v18 }
0x1fc0   :  { %1192 = vmatpush.msrb.mxu2 %v2163_v1 }
0x1fc2   :  { %1193 = vmatpush.msrb.mxu2 %v2181_v4 }
0x1fc4   :  { %1194 = vmatpush.msrb.mxu2 %v2194_v7 }
0x1fc6   :  { %1195 = vmatpush.msrb.mxu2 %v2202_v42 }
0x1fc8   :  { %1196 = vmatpush.msrb.mxu2 %v2210_v43 }
0x1fca   :  { %1197 = vmatpush.msrb.mxu2 %v2218_v44 }
0x1fcc   :  { %1198 = vmatpush.msrb.mxu2 %v2226_v45 }
0x1fce   :  { %1199 = vmatpush.msrb.mxu2 %v2234_v46 }
0x1fd0   :  { %1200 = vmatpush.msrb.mxu2 %v2241_v47 }
0x1fd2   :  { %1201 = vmatpush.msrb.mxu2 %v2248_v48 }
0x1fd4   :  { %1202 = vmatpush.msrb.mxu2 %v2255_v49 }
0x1fd6   :  { %1203 = vmatpush.msrb.mxu2 %v2265_v52 }
0x1fd8   :  { %1513 = vmatpush.msra.mxu2 %v2325_v24 }
0x1fda   :  { %1514 = vmatpush.msra.mxu2 %v2330_v25 }
0x1fdc   :  { %1515 = vmatpush.msra.mxu2 %v2337_v26 }
0x1fde   :  { %1516 = vmatpush.msra.mxu2 %v2345_v29 }
0x203a   :  { %v1066_v19 = vpop.f32.mrf.mxu2 }
0x203b   :  { %v2444_v28 = vadd.f32 %v1066_v19, %v2372_v34 }
0x203d   :  { %v1069_v20 = vsel %vm842_vm8, %v2444_v28, -inf }
0x203e   :  { %1070 = vmax.xlane.f32.xlu1 %v1069_v20 }
0x2042   :  { %v1112_v22 = vpop.f32.mrf.mxu2 }
0x20b1   :  { %v1071_v21 = vpop.xlane.xlu1 %1070 }
0x20b2   :  { %vm1072_vm3 = vcmp.eq.f32.partialorder %v2444_v28, %v1071_v21 }
0x20b3   :  { %1727 = vmatmul.msk.f32.vlgmr.msra.gmra.mxu3 %vm1072_vm3, %v1890_v27 }
0x20b4   :  { %1446 = vmatpush.msra.mxu3 %v2157_v39 }
0x20b6   :  { %1447 = vmatpush.msra.mxu3 %v2169_v2 }
0x20b8   :  { %1448 = vmatpush.msra.mxu3 %v2175_v40 }
0x20ba   :  { %1449 = vmatpush.msra.mxu3 %v2188_v41 }
0x2136   :  { %v1092_v30 = vpop.f32.mrf.mxu3 }
0x2137   :  { %v1113_v32 = vadd.f32 %v1112_v22, %v1092_v30 }
0x2139   :  { %v1134_v33 = vadd.f32 %v1113_v32, %v2314_v59  ;;  %v1729_v35 = vmul.f32 -1.442695, %v1113_v32 }
0x213b   :  { %1136 = vrot.lane.b32.xlu2 %v1134_v33, %s1892_s28  ;;  %1827 = vpow2.f32 %v1729_v35 }
0x2141   :  { %v1828_v51 = vpop.eup %1827 }
0x2142   :  { %v1118_v53 = vadd.f32 1.0, %v1828_v51 }
0x2144   :  { %1829 = vrcp.f32 %v1118_v53  ;;  %v1130_v60 = vand.u32 2147483648, %v1118_v53  ;;  %vm1124_vm6 = vweird.f32 %v1118_v53  ;;  %v1128_v61 = vand.u32 2147483647, %v1118_v53 }
0x2146   :  { %v1131_v63 = vor.u32 1.1754944e-38, %v1130_v60  ;;  %vm1129_vm9 = vcmp.eq.f32.partialorder %v1128_v61, 8.507059e+37 }
0x214a   :  { %v1830_v54 = vpop.eup %1829 }
0x214b   :  { %v1120_v55 = vmul.f32 %v1830_v54, %v1118_v53  ;;  %vm1125_vm4 = vweird.f32 %v1830_v54 }
0x214c   :  { %vm1126_vm7 = vmor %vm1124_vm6, %vm1125_vm4 }
0x214d   :  { %v1121_v56 = vsub.f32 1.0, %v1120_v55 }
0x214f   :  { %v1122_v57 = vmul.f32 %v1830_v54, %v1121_v56 }
0x2151   :  { %v1123_v58 = vadd.f32 %v1830_v54, %v1122_v57 }
0x2153   :  { %v1127_v62 = vsel %vm1126_vm7, %v1830_v54, %v1123_v58 }
0x2154   :  { %v1132_v3 = vsel %vm1129_vm9, %v1131_v63, %v1127_v62 }
0x2195   :  { %v1137_v0 = vpop.permute.xlu2 %1136 }
0x2196   :  { %v1139_v5 = vmul.f32 %v1137_v0, %v1132_v3 }
0x2198   :  { %1141 = vrot.lane.b32.xlu0 %v1139_v5, %s1889_s4 }
0x220a   :  { %v1142_v6 = vpop.permute.xlu0 %1141 }
0x220b   :  { %v1144_v8 = vadd.f32 %v1142_v6, %v1113_v32 }
0x220d   :  { %1831 = vtanh.f32 %v1144_v8 }
0x2213   :  { %v1832_v9 = vpop.eup %1831 }
0x2214   :  { %v1146_v10 = vsub.f32 %v2417_v17, %v1832_v9 }
0x2216   :  { %1148 = vrot.lane.b32.xlu0 %v1146_v10, %s1891_s2 }
0x2288   :  { %v1149_v11 = vpop.permute.xlu0 %1148 }
0x2289   :  { %v1151_v12 = vmul.f32 %v1149_v11, %v1132_v3 }
0x228b   :  { %1153 = vrot.lane.b32.xlu0 %v1151_v12, %s1892_s28 }
0x22fd   :  { %v1154_v13 = vpop.permute.xlu0 %1153 }
0x22fe   :  { %v2460_v14 = vadd.f32 %v1832_v9, %v1154_v13 }
0x2300   :  { %1158 = vrot.lane.b32.xlu2 %v2460_v14, %s1889_s4 }
0x235a   :  { %v1159_v15 = vpop.permute.xlu2 %1158 }
0x235b   :  { %1730 = vmatmul.msk.f32.vlgmr.msra.gmra.mxu0 %vm83_vm5, %v1159_v15 }
0x235c   :  { %1301 = vmatpush.msra.mxu0 %v2132_v36 }
0x235e   :  { %1302 = vmatpush.msra.mxu0 %v2137_v31 }
0x2360   :  { %1303 = vmatpush.msra.mxu0 %v2144_v37 }
0x2362   :  { %1304 = vmatpush.msra.mxu0 %v2151_v38 }
0x2363   :  { %1733 = vmatmul.msk.f32.vlgmr.msrb.gmra.mxu0 %vm83_vm5, %v1159_v15 }
0x2364   :  { %1305 = vmatpush.msra.mxu0 %v2163_v1 }
0x2366   :  { %1306 = vmatpush.msra.mxu0 %v2181_v4 }
0x2368   :  { %1307 = vmatpush.msra.mxu0 %v2194_v7 }
0x236a   :  { %1308 = vmatpush.msra.mxu0 %v2202_v42 }
0x236c   :  { %1309 = vmatpush.msra.mxu0 %v2210_v43 }
0x236e   :  { %1310 = vmatpush.msra.mxu0 %v2218_v44 }
0x2370   :  { %1311 = vmatpush.msra.mxu0 %v2226_v45 }
0x2372   :  { %1312 = vmatpush.msra.mxu0 %v2234_v46 }
0x2374   :  { %1313 = vmatpush.msra.mxu0 %v2241_v47 }
0x2376   :  { %1314 = vmatpush.msra.mxu0 %v2248_v48 }
0x2378   :  { %1315 = vmatpush.msra.mxu0 %v2255_v49 }
0x237a   :  { %1316 = vmatpush.msra.mxu0 %v2265_v52 }
0x237c   :  { %1626 = vmatpush.msrb.mxu0 %v2325_v24 }
0x237e   :  { %1627 = vmatpush.msrb.mxu0 %v2330_v25 }
0x2380   :  { %1628 = vmatpush.msrb.mxu0 %v2337_v26 }
0x2382   :  { %1629 = vmatpush.msrb.mxu0 %v2345_v29 }
0x23d8   :  { %v1179_v16 = vpop.f32.mrf.mxu0 }
0x23d9   :  { %v2487_v17 = vadd.f32 %v1179_v16, %v2372_v34 }
0x23db   :  { %v1182_v18 = vsel %vm842_vm8, %v2487_v17, -inf }
0x23dc   :  { %1183 = vmax.xlane.f32.xlu0 %v1182_v18 }
0x23e0   :  { %v1225_v24 = vpop.f32.mrf.mxu0 }
0x244f   :  { %v1184_v19 = vpop.xlane.xlu0 %1183 }
0x2450   :  { %vm1185_vm10 = vcmp.eq.f32.partialorder %v2487_v17, %v1184_v19 }
0x2451   :  { %1732 = vmatmul.msk.f32.vlgmr.msrb.gmra.mxu2 %vm1185_vm10, %v1890_v27 }
0x2452   :  { %1559 = vmatpush.msrb.mxu2 %v2157_v39 }
0x2454   :  { %1560 = vmatpush.msrb.mxu2 %v2169_v2 }
0x2456   :  { %1561 = vmatpush.msrb.mxu2 %v2175_v40 }
0x2458   :  { %1562 = vmatpush.msrb.mxu2 %v2188_v41 }
0x24d4   :  { %v1205_v25 = vpop.f32.mrf.mxu2 }
0x24d5   :  { %v1226_v26 = vadd.f32 %v1225_v24, %v1205_v25 }
0x24d7   :  { %v1247_v29 = vadd.f32 %v1226_v26, %v2314_v59  ;;  %v1734_v20 = vmul.f32 -1.442695, %v1226_v26 }
0x24d9   :  { %1249 = vrot.lane.b32.xlu2 %v1247_v29, %s1892_s28  ;;  %1833 = vpow2.f32 %v1734_v20 }
0x24df   :  { %v1834_v21 = vpop.eup %1833 }
0x24e0   :  { %v1231_v22 = vadd.f32 1.0, %v1834_v21 }
0x24e2   :  { %1835 = vrcp.f32 %v1231_v22  ;;  %v1243_v40 = vand.u32 2147483648, %v1231_v22  ;;  %vm1237_vm12 = vweird.f32 %v1231_v22  ;;  %v1241_v41 = vand.u32 2147483647, %v1231_v22 }
0x24e4   :  { %v1244_v51 = vor.u32 1.1754944e-38, %v1243_v40  ;;  %vm1242_vm14 = vcmp.eq.f32.partialorder %v1241_v41, 8.507059e+37 }
0x24e8   :  { %v1836_v30 = vpop.eup %1835 }
0x24e9   :  { %v1233_v39 = vmul.f32 %v1836_v30, %v1231_v22  ;;  %vm1238_vm11 = vweird.f32 %v1836_v30 }
0x24ea   :  { %vm1239_vm13 = vmor %vm1237_vm12, %vm1238_vm11 }
0x24eb   :  { %v1234_v32 = vsub.f32 1.0, %v1233_v39 }
0x24ed   :  { %v1235_v2 = vmul.f32 %v1836_v30, %v1234_v32 }
0x24ef   :  { %v1236_v33 = vadd.f32 %v1836_v30, %v1235_v2 }
0x24f1   :  { %v1240_v35 = vsel %vm1239_vm13, %v1836_v30, %v1236_v33 }
0x24f2   :  { %v1245_v54 = vsel %vm1242_vm14, %v1244_v51, %v1240_v35 }
0x2533   :  { %v1250_v53 = vpop.permute.xlu2 %1249 }
0x2534   :  { %v1252_v55 = vmul.f32 %v1250_v53, %v1245_v54 }
0x2536   :  { %1254 = vrot.lane.b32.xlu2 %v1252_v55, %s1889_s4 }
0x2590   :  { %v1255_v56 = vpop.permute.xlu2 %1254 }
0x2591   :  { %v1257_v57 = vadd.f32 %v1255_v56, %v1226_v26 }
0x2593   :  { %1837 = vtanh.f32 %v1257_v57 }
0x2599   :  { %v1838_v58 = vpop.eup %1837 }
0x259a   :  { %v1259_v60 = vsub.f32 %v2460_v14, %v1838_v58 }
0x259c   :  { %1261 = vrot.lane.b32.xlu1 %v1259_v60, %s1891_s2 }
0x260e   :  { %v1262_v61 = vpop.permute.xlu1 %1261 }
0x260f   :  { %v1264_v62 = vmul.f32 %v1262_v61, %v1245_v54 }
0x2611   :  { %1266 = vrot.lane.b32.xlu2 %v1264_v62, %s1892_s28 }
0x266b   :  { %v1267_v63 = vpop.permute.xlu2 %1266 }
0x266c   :  { %v1269_v0 = vadd.f32 %v1838_v58, %v1267_v63 }
0x266e   :  { %1271 = vrot.lane.b32.xlu2 %v1269_v0, %s1889_s4 }
0x26c8   :  { %v1272_v3 = vpop.permute.xlu2 %1271 }
0x26c9   :  { %1735 = vmatmul.msk.f32.vlgmr.msra.gmra.mxu1 %vm83_vm5, %v1272_v3 }
0x26ca   :  { %1414 = vmatpush.msra.mxu1 %v2132_v36 }
0x26cc   :  { %1415 = vmatpush.msra.mxu1 %v2137_v31 }
0x26ce   :  { %1416 = vmatpush.msra.mxu1 %v2144_v37 }
0x26d0   :  { %1417 = vmatpush.msra.mxu1 %v2151_v38 }
0x26d1   :  { %1738 = vmatmul.msk.f32.vlgmr.msrb.gmra.mxu1 %vm83_vm5, %v1272_v3 }
0x26d2   :  { %1418 = vmatpush.msra.mxu1 %v2163_v1 }
0x26d4   :  { %1419 = vmatpush.msra.mxu1 %v2181_v4 }
0x26d6   :  { %1420 = vmatpush.msra.mxu1 %v2194_v7 }
0x26d8   :  { %1421 = vmatpush.msra.mxu1 %v2202_v42 }
0x26da   :  { %1422 = vmatpush.msra.mxu1 %v2210_v43 }
0x26dc   :  { %1423 = vmatpush.msra.mxu1 %v2218_v44 }
0x26de   :  { %1424 = vmatpush.msra.mxu1 %v2226_v45 }
0x26e0   :  { %1425 = vmatpush.msra.mxu1 %v2234_v46 }
0x26e2   :  { %1426 = vmatpush.msra.mxu1 %v2241_v47 }
0x26e4   :  { %1427 = vmatpush.msra.mxu1 %v2248_v48 }
0x26e6   :  { %1428 = vmatpush.msra.mxu1 %v2255_v49 }
0x26e8   :  { %1429 = vmatpush.msra.mxu1 %v2265_v52 }
0x2746   :  { %v1292_v5 = vpop.f32.mrf.mxu1 }
0x2747   :  { %v2523_v6 = vadd.f32 %v1292_v5, %v2372_v34 }
0x2749   :  { %v1295_v8 = vsel %vm842_vm8, %v2523_v6, -inf }
0x274a   :  { %1296 = vmax.xlane.f32.xlu2 %v1295_v8 }
0x274e   :  { %v1338_v10 = vpop.f32.mrf.mxu1 }
0x27bd   :  { %v1297_v9 = vpop.xlane.xlu2 %1296 }
0x27be   :  { %vm1298_vm15 = vcmp.eq.f32.partialorder %v2523_v6, %v1297_v9 }
0x27bf   :  { %1737 = vmatmul.msk.f32.vlgmr.msra.gmra.mxu0 %vm1298_vm15, %v1890_v27 }
0x283c   :  { %v1318_v11 = vpop.f32.mrf.mxu0 }
0x283d   :  { %v1339_v12 = vadd.f32 %v1338_v10, %v1318_v11 }
0x283f   :  { %v1360_v13 = vadd.f32 %v1339_v12, %v2314_v59  ;;  %v1739_v14 = vmul.f32 -1.442695, %v1339_v12 }
0x2841   :  { %1362 = vrot.lane.b32.xlu1 %v1360_v13, %s1892_s28  ;;  %1839 = vpow2.f32 %v1739_v14 }
0x2847   :  { %v1840_v15 = vpop.eup %1839 }
0x2848   :  { %v1344_v16 = vadd.f32 1.0, %v1840_v15 }
0x284a   :  { %1841 = vrcp.f32 %v1344_v16  ;;  %v1356_v29 = vand.u32 2147483648, %v1344_v16  ;;  %vm1350_vm1 = vweird.f32 %v1344_v16  ;;  %v1354_v20 = vand.u32 2147483647, %v1344_v16 }
0x284c   :  { %v1357_v22 = vor.u32 1.1754944e-38, %v1356_v29  ;;  %vm1355_vm3 = vcmp.eq.f32.partialorder %v1354_v20, 8.507059e+37 }
0x2850   :  { %v1842_v18 = vpop.eup %1841 }
0x2851   :  { %v1346_v19 = vmul.f32 %v1842_v18, %v1344_v16  ;;  %vm1351_vm0 = vweird.f32 %v1842_v18 }
0x2852   :  { %vm1352_vm2 = vmor %vm1350_vm1, %vm1351_vm0  ;;  %vm1656_vm0 = vcmask 1041408   ;;  %vm1658_vm1 = vcmask 1042432  }
0x2853   :  { %v1347_v24 = vsub.f32 1.0, %v1346_v19 }
0x2855   :  { %v1348_v25 = vmul.f32 %v1842_v18, %v1347_v24 }
0x2857   :  { %v1349_v26 = vadd.f32 %v1842_v18, %v1348_v25 }
0x2859   :  { %v1353_v21 = vsel %vm1352_vm2, %v1842_v18, %v1349_v26  ;;  %vm1660_vm2 = vcmask 1043456  }
0x285a   :  { %v1358_v39 = vsel %vm1355_vm3, %v1357_v22, %v1353_v21  ;;  %vm1664_vm3 = vcmask 1045504  }
0x28b3   :  { %v1363_v30 = vpop.permute.xlu1 %1362 }
0x28b4   :  { %v1365_v32 = vmul.f32 %v1363_v30, %v1358_v39 }
0x28b6   :  { %1367 = vrot.lane.b32.xlu0 %v1365_v32, %s1889_s4 }
0x2928   :  { %v1368_v2 = vpop.permute.xlu0 %1367 }
0x2929   :  { %v1370_v33 = vadd.f32 %v1368_v2, %v1339_v12 }
0x292b   :  { %1843 = vtanh.f32 %v1370_v33 }
0x2931   :  { %v1844_v40 = vpop.eup %1843 }
0x2932   :  { %v1372_v41 = vsub.f32 %v1269_v0, %v1844_v40 }
0x2934   :  { %1374 = vrot.lane.b32.xlu1 %v1372_v41, %s1891_s2 }
0x29a6   :  { %v1375_v35 = vpop.permute.xlu1 %1374 }
0x29a7   :  { %v1377_v51 = vmul.f32 %v1375_v35, %v1358_v39 }
0x29a9   :  { %1379 = vrot.lane.b32.xlu1 %v1377_v51, %s1892_s28 }
0x2a1b   :  { %v1380_v53 = vpop.permute.xlu1 %1379 }
0x2a1c   :  { %v1382_v54 = vadd.f32 %v1844_v40, %v1380_v53 }
0x2a1e   :  { %1384 = vrot.lane.b32.xlu1 %v1382_v54, %s1889_s4 }
0x2a90   :  { %v1385_v55 = vpop.permute.xlu1 %1384 }
0x2a91   :  { %1740 = vmatmul.msk.f32.vlgmr.msrb.gmra.mxu3 %vm83_vm5, %v1385_v55 }
0x2a92   :  { %1527 = vmatpush.msrb.mxu3 %v2132_v36 }
0x2a94   :  { %1528 = vmatpush.msrb.mxu3 %v2137_v31 }
0x2a96   :  { %1529 = vmatpush.msrb.mxu3 %v2144_v37 }
0x2a98   :  { %1530 = vmatpush.msrb.mxu3 %v2151_v38 }
0x2a99   :  { %1743 = vmatmul.msk.f32.vlgmr.msra.gmra.mxu3 %vm83_vm5, %v1385_v55 }
0x2a9a   :  { %1531 = vmatpush.msrb.mxu3 %v2163_v1 }
0x2a9c   :  { %1532 = vmatpush.msrb.mxu3 %v2181_v4 }
0x2a9e   :  { %1533 = vmatpush.msrb.mxu3 %v2194_v7 }
0x2aa0   :  { %1534 = vmatpush.msrb.mxu3 %v2202_v42 }
0x2aa2   :  { %1535 = vmatpush.msrb.mxu3 %v2210_v43 }
0x2aa4   :  { %1536 = vmatpush.msrb.mxu3 %v2218_v44 }
0x2aa6   :  { %1537 = vmatpush.msrb.mxu3 %v2226_v45 }
0x2aa8   :  { %1538 = vmatpush.msrb.mxu3 %v2234_v46 }
0x2aaa   :  { %1539 = vmatpush.msrb.mxu3 %v2241_v47 }
0x2aac   :  { %1540 = vmatpush.msrb.mxu3 %v2248_v48 }
0x2aae   :  { %1541 = vmatpush.msrb.mxu3 %v2255_v49 }
0x2ab0   :  { %1542 = vmatpush.msrb.mxu3 %v2265_v52 }
0x2b14   :  { %v1405_v36 = vpop.f32.mrf.mxu3 }
0x2b15   :  { %v2554_v31 = vadd.f32 %v1405_v36, %v2372_v34 }
0x2b17   :  { %v1408_v37 = vsel %vm842_vm8, %v2554_v31, -inf }
0x2b18   :  { %1409 = vmax.xlane.f32.xlu0 %v1408_v37 }
0x2b1c   :  { %v1451_v1 = vpop.f32.mrf.mxu3 }
0x2b8b   :  { %v1410_v38 = vpop.xlane.xlu0 %1409 }
0x2b8c   :  { %vm1411_vm4 = vcmp.eq.f32.partialorder %v2554_v31, %v1410_v38 }
0x2b8d   :  { %1742 = vmatmul.msk.f32.vlgmr.msra.gmra.mxu1 %vm1411_vm4, %v1890_v27  ;;  %vm1666_vm4 = vcmask 1046528  }
0x2c0a   :  { %v1431_v4 = vpop.f32.mrf.mxu1 }
0x2c0b   :  { %v1452_v7 = vadd.f32 %v1451_v1, %v1431_v4 }
0x2c0d   :  { %v1473_v42 = vadd.f32 %v1452_v7, %v2314_v59  ;;  %v1744_v43 = vmul.f32 -1.442695, %v1452_v7 }
0x2c0f   :  { %1475 = vrot.lane.b32.xlu1 %v1473_v42, %s1892_s28  ;;  %1845 = vpow2.f32 %v1744_v43  ;;  %v1635_v42 = vrot.slane %v2402_v23, 7  ;;  %v1638_v43 = vrot.slane %v2444_v28, 6 }
0x2c15   :  { %v1846_v44 = vpop.eup %1845 }
0x2c16   :  { %v1457_v45 = vadd.f32 1.0, %v1846_v44  ;;  %v1641_v44 = vrot.slane %v2487_v17, 5 }
0x2c18   :  { %1847 = vrcp.f32 %v1457_v45  ;;  %v1469_v56 = vand.u32 2147483648, %v1457_v45  ;;  %vm1463_vm7 = vweird.f32 %v1457_v45  ;;  %v1467_v57 = vand.u32 2147483647, %v1457_v45 }
0x2c1a   :  { %v1470_v60 = vor.u32 1.1754944e-38, %v1469_v56  ;;  %vm1468_vm10 = vcmp.eq.f32.partialorder %v1467_v57, 8.507059e+37 }
0x2c1e   :  { %v1848_v46 = vpop.eup %1847 }
0x2c1f   :  { %v1459_v47 = vmul.f32 %v1848_v46, %v1457_v45  ;;  %vm1464_vm6 = vweird.f32 %v1848_v46  ;;  %v1644_v45 = vrot.slane %v2523_v6, 4 }
0x2c20   :  { %vm1465_vm9 = vmor %vm1463_vm7, %vm1464_vm6 }
0x2c21   :  { %v1460_v48 = vsub.f32 1.0, %v1459_v47  ;;  %v1647_v47 = vrot.slane %v2554_v31, 3 }
0x2c23   :  { %v1461_v49 = vmul.f32 %v1848_v46, %v1460_v48 }
0x2c25   :  { %v1462_v52 = vadd.f32 %v1848_v46, %v1461_v49 }
0x2c27   :  { %v1466_v58 = vsel %vm1465_vm9, %v1848_v46, %v1462_v52  ;;  %v1655_v46 = vsel %vm842_vm8, %v2375_v50, %v1635_v42 }
0x2c28   :  { %v1471_v62 = vsel %vm1468_vm10, %v1470_v60, %v1466_v58  ;;  %v1657_v48 = vsel %vm1656_vm0, %v1655_v46, %v1638_v43 }
0x2c29   :  { %v1659_v23 = vsel %vm1658_vm1, %v1657_v48, %v1641_v44 }
0x2c2a   :  { %v1661_v56 = vsel %vm1660_vm2, %v1659_v23, %v1644_v45 }
0x2c81   :  { %v1476_v61 = vpop.permute.xlu1 %1475 }
0x2c82   :  { %v1478_v63 = vmul.f32 %v1476_v61, %v1471_v62 }
0x2c84   :  { %1480 = vrot.lane.b32.xlu2 %v1478_v63, %s1889_s4 }
0x2cde   :  { %v1481_v0 = vpop.permute.xlu2 %1480 }
0x2cdf   :  { %v1483_v3 = vadd.f32 %v1481_v0, %v1452_v7 }
0x2ce1   :  { %1849 = vtanh.f32 %v1483_v3 }
0x2ce7   :  { %v1850_v5 = vpop.eup %1849 }
0x2ce8   :  { %v1485_v8 = vsub.f32 %v1382_v54, %v1850_v5 }
0x2cea   :  { %1487 = vrot.lane.b32.xlu1 %v1485_v8, %s1891_s2 }
0x2d5c   :  { %v1488_v9 = vpop.permute.xlu1 %1487 }
0x2d5d   :  { %v1490_v10 = vmul.f32 %v1488_v9, %v1471_v62 }
0x2d5f   :  { %1492 = vrot.lane.b32.xlu1 %v1490_v10, %s1892_s28 }
0x2dd1   :  { %v1493_v11 = vpop.permute.xlu1 %1492 }
0x2dd2   :  { %v1495_v12 = vadd.f32 %v1850_v5, %v1493_v11 }
0x2dd4   :  { %1497 = vrot.lane.b32.xlu1 %v1495_v12, %s1889_s4 }
0x2e46   :  { %v1498_v13 = vpop.permute.xlu1 %1497 }
0x2e47   :  { %1745 = vmatmul.msk.f32.vlgmr.msra.gmra.mxu2 %vm83_vm5, %v1498_v13 }
0x2e4f   :  { %1748 = vmatmul.msk.f32.vlgmr.msrb.gmra.mxu2 %vm83_vm5, %v1498_v13 }
0x2eca   :  { %v1518_v14 = vpop.f32.mrf.mxu2 }
0x2ecb   :  { %v2569_v15 = vadd.f32 %v1518_v14, %v2372_v34 }
0x2ecd   :  { %v1521_v16 = vsel %vm842_vm8, %v2569_v15, -inf  ;;  %v1650_v49 = vrot.slane %v2569_v15, 2 }
0x2ece   :  { %1522 = vmax.xlane.f32.xlu2 %v1521_v16 }
0x2ed2   :  { %v1564_v19 = vpop.f32.mrf.mxu2 }
0x2f41   :  { %v1523_v18 = vpop.xlane.xlu2 %1522 }
0x2f42   :  { %vm1524_vm11 = vcmp.eq.f32.partialorder %v2569_v15, %v1523_v18 }
0x2f43   :  { %1747 = vmatmul.msk.f32.vlgmr.msrb.gmra.mxu3 %vm1524_vm11, %v1890_v27 }
0x2fc6   :  { %v1544_v24 = vpop.f32.mrf.mxu3 }
0x2fc7   :  { %v1565_v25 = vadd.f32 %v1564_v19, %v1544_v24 }
0x2fc9   :  { %v1586_v26 = vadd.f32 %v1565_v25, %v2314_v59  ;;  %v1749_v29 = vmul.f32 -1.442695, %v1565_v25 }
0x2fcb   :  { %1588 = vrot.lane.b32.xlu1 %v1586_v26, %s1892_s28  ;;  %1851 = vpow2.f32 %v1749_v29 }
0x2fd1   :  { %v1852_v20 = vpop.eup %1851 }
0x2fd2   :  { %v1570_v21 = vadd.f32 1.0, %v1852_v20 }
0x2fd4   :  { %1853 = vrcp.f32 %v1570_v21  ;;  %v1582_v33 = vand.u32 2147483648, %v1570_v21  ;;  %vm1576_vm13 = vweird.f32 %v1570_v21  ;;  %v1580_v27 = vand.u32 2147483647, %v1570_v21 }
0x2fd6   :  { %v1583_v41 = vor.u32 1.1754944e-38, %v1582_v33  ;;  %vm1581_vm15 = vcmp.eq.f32.partialorder %v1580_v27, 8.507059e+37 }
0x2fda   :  { %v1854_v22 = vpop.eup %1853 }
0x2fdb   :  { %v1572_v30 = vmul.f32 %v1854_v22, %v1570_v21  ;;  %vm1577_vm12 = vweird.f32 %v1854_v22 }
0x2fdc   :  { %vm1578_vm14 = vmor %vm1576_vm13, %vm1577_vm12 }
0x2fdd   :  { %v1573_v39 = vsub.f32 1.0, %v1572_v30 }
0x2fdf   :  { %v1574_v32 = vmul.f32 %v1854_v22, %v1573_v39 }
0x2fe1   :  { %v1575_v2 = vadd.f32 %v1854_v22, %v1574_v32 }
0x2fe3   :  { %v1579_v40 = vsel %vm1578_vm14, %v1854_v22, %v1575_v2 }
0x2fe4   :  { %v1584_v35 = vsel %vm1581_vm15, %v1583_v41, %v1579_v40 }
0x303d   :  { %v1589_v59 = vpop.permute.xlu1 %1588 }
0x303e   :  { %v1591_v51 = vmul.f32 %v1589_v59, %v1584_v35 }
0x3040   :  { %1593 = vrot.lane.b32.xlu0 %v1591_v51, %s1889_s4 }
0x30b2   :  { %v1594_v53 = vpop.permute.xlu0 %1593 }
0x30b3   :  { %v1596_v54 = vadd.f32 %v1594_v53, %v1565_v25 }
0x30b5   :  { %1855 = vtanh.f32 %v1596_v54 }
0x30bb   :  { %v1856_v55 = vpop.eup %1855 }
0x30bc   :  { %v1598_v36 = vsub.f32 %v1495_v12, %v1856_v55 }
0x30be   :  { %1600 = vrot.lane.b32.xlu1 %v1598_v36, %s1891_s2 }
0x3130   :  { %v1601_v37 = vpop.permute.xlu1 %1600 }
0x3131   :  { %v1603_v38 = vmul.f32 %v1601_v37, %v1584_v35 }
0x3133   :  { %1605 = vrot.lane.b32.xlu1 %v1603_v38, %s1892_s28 }
0x31a5   :  { %v1606_v1 = vpop.permute.xlu1 %1605 }
0x31a6   :  { %v1608_v4 = vadd.f32 %v1856_v55, %v1606_v1 }
0x31a8   :  { %1610 = vrot.lane.b32.xlu0 %v1608_v4, %s1889_s4  ;;  %s1685_s4 = sshll.u32 %s1893_s8, 4  ;;  %s1686_s4 = int_to_ptr.vmem [resolvable:$true] %s1685_s4 }
0x321a   :  { %v1611_v7 = vpop.permute.xlu0 %1610 }
0x321b   :  { %1750 = vmatmul.msk.f32.vlgmr.msrb.gmra.mxu0 %vm83_vm5, %v1611_v7  ;;  %vm1662_vm5 = vcmask 1044480  }
0x321c   :  { %v1663_v57 = vsel %vm1662_vm5, %v1661_v56, %v1647_v47 }
0x321d   :  { %v1665_v6 = vsel %vm1664_vm3, %v1663_v57, %v1650_v49 }
0x3298   :  { %v1631_v52 = vpop.f32.mrf.mxu0 }
0x3299   :  { %v1632_v28 = vadd.f32 %v1631_v52, %v2372_v34 }
0x329b   :  { %v1653_v17 = vrot.slane %v1632_v28, 1 }
0x329d   :  { %v1667_v58 = vsel %vm1666_vm4, %v1665_v6, %v1653_v17 }
0x329e   :  { %1668 = vmax.xlane.f32.xlu1 %v1667_v58 }
0x3311   :  { %v1669_v50 = vpop.xlane.xlu1 %1668 }
0x3312   :  { %v1670_v60 = vsub.f32 %v1667_v58, %v1669_v50 }
0x3314   :  { %v1671_v31 = vmul.f32 1.442695, %v1670_v60 }
0x3316   :  { %1857 = vpow2.f32 %v1671_v31 }
0x331c   :  { %v1858_v61 = vpop.eup %1857 }
0x331d   :  { %1673 = vadd.xlane.f32.xlu0 %v1858_v61 }
0x3390   :  { %v1674_v62 = vpop.xlane.xlu0 %1673 }
0x3391   :  { %1859 = vlog2.f32 %v1674_v62 }
0x3397   :  { %v1860_v63 = vpop.eup %1859 }
0x3398   :  { %v1676_v0 = vmul.f32 0.6931472, %v1860_v63 }
0x339a   :  { %v1677_v34 = vadd.f32 %v1676_v0, %v1669_v50 }
0x339c   :  { %v1678_v3 = vsub.f32 %v1667_v58, %v1677_v34 }
0x339e   :  { %1679 = vst [vmem:[#allocation2] sm:$0xff] %v1678_v3 }
0x339f   :  { %1690 = dma.vmem_to_hbm [thread:$0]  %s1686_s4, 128, %s1688_s14, [#allocation3]  }
0x33a0   :  { %1885 = dma.done.wait [#allocation3], 128  }
0x33a1   :  { %1886 = vsyncadd [#allocation3], 4294967168 }
0x33a2   :  { %1695 = vsyncpa [#allocation3], 1 }

</bundles_post_ra>
